<compile_context>
chip_gen: v7x
topology: tpu7x:2x2x1
jax: 0.10.0
libtpu: 0.0.40
codegen_flags: <defaults>
</compile_context>

<pallas_src>
import functools

import jax
import jax.numpy as jnp
from jax import lax
from jax.experimental import pallas as pl
from jax.experimental.pallas import tpu as pltpu


def _mmd_partials_kernel(ax_ref, ay_ref, bx_ref, by_ref, out_ref):
    """One (row_block, col_block) tile of the RBF kernel matrices.

    Inputs are gamma/scale-augmented operands (see mmd_forward):
        A = [2*u, -|u|^2, 1, 0pad]   B = [u, 1, -|u|^2, 0pad]
    so A_i . B_j = 2 u_i.u_j - |u_i|^2 - |u_j|^2 = -gamma * d2_ij, i.e. one MXU
    matmul per tile yields the RBF exponent directly.  Row partial sums are
    accumulated into the VMEM-resident output block (its index map is constant
    along the column axis, which is the innermost "arbitrary" grid dimension).
    """
    r = pl.program_id(0)
    c = pl.program_id(1)
    tm = ax_ref.shape[0]
    tn = bx_ref.shape[0]

    ax = ax_ref[...]          # (tm, D)  x rows
    ay = ay_ref[...]          # (tm, D)  y rows
    bx = bx_ref[...]          # (tn, D)  x cols
    by = by_ref[...]          # (tn, D)  y cols

    dn_tt = (((1,), (1,)), ((), ()))      # a @ b.T, f32 accumulation on the MXU

    def rbf(a, b):
        e = lax.dot_general(a, b, dn_tt, preferred_element_type=jnp.float32)
        # exponent is mathematically <= 0; min(., 0) fuses torch's d2 >= 0
        # clamp and the negation.
        return jnp.exp(jnp.minimum(e, 0.0))

    k_xy = rbf(ax, by)        # k(x_r, y_c)
    k_yx = rbf(ay, bx)        # k(y_r, x_c) -> row sums == column sums of k_xy
    k_xx = rbf(ax, bx)
    k_yy = rbf(ay, by)

    # Enforce the unit diagonal exactly (unit_diagonal=True semantics) instead
    # of relying on f32 cancellation inside the MXU.
    row_ids = r * tm + lax.broadcasted_iota(jnp.int32, (tm, tn), 0)
    col_ids = c * tn + lax.broadcasted_iota(jnp.int32, (tm, tn), 1)
    diag = row_ids == col_ids
    k_xx = jnp.where(diag, 1.0, k_xx)
    k_yy = jnp.where(diag, 1.0, k_yy)

    def rsum(a):              # lane-axis reduce on the VPU/XLU (not the MXU)
        return jnp.sum(a, axis=-1, keepdims=True)

    part = jnp.concatenate([
        rsum(k_xx),                        # 0: row sums of k_xx (diag == 1)
        rsum(k_yy),                        # 1: row sums of k_yy (diag == 1)
        rsum(k_xy),                        # 2: k_xy row sums  (k_xy_sums_1)
        rsum(k_yx),                        # 3: k_xy col sums  (k_xy_sums_0)
        rsum(k_xx * k_xx),                 # 4: row sums of k_xx^2
        rsum(k_yy * k_yy),                 # 5: row sums of k_yy^2
        rsum(k_xy * k_xy),                 # 6: row sums of k_xy^2
        jnp.zeros((tm, 1), jnp.float32),   # 7: pad to 8 lanes
    ], axis=1)                                              # (tm, 8)

    @pl.when(c == 0)
    def _():
        out_ref[...] = jnp.zeros_like(out_ref)
    out_ref[...] += part


def _mmd_finalize_kernel(p_ref, out_ref, *, m, biased, min_var_est):
    """Reduce the (m, 8) row partials to (mmd2, ratio).  Runs once, O(m) data."""
    mf = float(m)
    p = p_ref[...]                              # (m, 8)

    kt_xx = p[:, 0:1] - 1.0                     # row sums minus unit diagonal
    kt_yy = p[:, 1:2] - 1.0
    xy1 = p[:, 2:3]                             # k_xy_sums_1
    xy0 = p[:, 3:4]                             # k_xy_sums_0

    q = jnp.concatenate([
        p[:, 0:7],                   # 0-6: totals of the raw row partials
        kt_xx * kt_xx,               # 7
        kt_yy * kt_yy,               # 8
        xy1 * xy1,                   # 9
        xy0 * xy0,                   # 10
        kt_xx * xy1,                 # 11
        kt_yy * xy0,                 # 12
        jnp.zeros((m, 3), jnp.float32),
    ], axis=1)                                  # (m, 16)

    ones_row = jnp.ones((1, m), jnp.float32)
    dn_row = (((1,), (0,)), ((), ()))
    t = lax.dot_general(ones_row, q, dn_row,
                        preferred_element_type=jnp.float32)   # (1, 16)

    kt_xx_sum = t[0, 0] - mf
    kt_yy_sum = t[0, 1] - mf
    k_xy_sum = t[0, 2]
    kt_xx_2_sum = t[0, 4] - mf          # unit diagonal: sum(diag^2) = m
    kt_yy_2_sum = t[0, 5] - mf
    k_xy_2_sum = t[0, 6]
    dot_kt_xx = t[0, 7]
    dot_kt_yy = t[0, 8]
    dot_xy1 = t[0, 9]
    dot_xy0 = t[0, 10]
    dot_ktxx_xy1 = t[0, 11]
    dot_ktyy_xy0 = t[0, 12]

    if biased:
        mmd2 = ((kt_xx_sum + mf) / (mf * mf)
                + (kt_yy_sum + mf) / (mf * mf)
                - 2.0 * k_xy_sum / (mf * mf))
    else:
        # TODO(synk): unbiased branch mirrors the torch formula but the
        # self-test only exercises biased=True.
        mmd2 = (kt_xx_sum / (mf * (mf - 1.0))
                + kt_yy_sum / (mf * (mf - 1.0))
                - 2.0 * k_xy_sum / (mf * mf))

    c1 = 2.0 / (mf ** 2 * (mf - 1.0) ** 2)
    c2 = (4.0 * mf - 6.0) / (mf ** 3 * (mf - 1.0) ** 3)
    c3 = 4.0 * (mf - 2.0) / (mf ** 3 * (mf - 1.0) ** 2)
    c4 = 4.0 * (mf - 3.0) / (mf ** 3 * (mf - 1.0) ** 2)
    c5 = (8.0 * mf - 12.0) / (mf ** 5 * (mf - 1.0))
    c6 = 8.0 / (mf ** 3 * (mf - 1.0))

    var_est = (c1 * (2.0 * dot_kt_xx - kt_xx_2_sum + 2.0 * dot_kt_yy - kt_yy_2_sum)
               - c2 * (kt_xx_sum * kt_xx_sum + kt_yy_sum * kt_yy_sum)
               + c3 * (dot_xy1 + dot_xy0)
               - c4 * k_xy_2_sum
               - c5 * k_xy_sum * k_xy_sum
               + c6 * ((1.0 / mf) * (kt_xx_sum + kt_yy_sum) * k_xy_sum
                       - dot_ktxx_xy1 - dot_ktyy_xy0))

    # ratio = mmd2 / sqrt(max(var, eps)) -- single EUP rsqrt.
    ratio = mmd2 * lax.rsqrt(jnp.maximum(var_est, min_var_est))
    # TODO(synk): torch only logs a warning when mmd2 < 0 (no clamp); same here.

    out_ref[0] = mmd2
    out_ref[1] = ratio


def _pick_tile(m: int, target: int) -> int:
    """Largest tile <= target that divides m and keeps blocks sublane-aligned."""
    if m <= target:
        return m
    for step in (128, 8):
        t = (min(target, m) // step) * step
        while t >= step:
            if m % t == 0:
                return t
            t -= step
    # TODO(synk): no aligned divisor -> single block on this axis; generic
    # padding would require masking padded rows/cols in every partial sum.
    return m


def mmd_forward(x, y, scales=None, *, sigma: float = 1.0, biased: bool = True,
                min_var_est: float = 1e-8, block_rows: int = 512,
                block_cols: int = 512):
    """Pallas equivalent of MMD.forward(x, y) with a BasicRBFKernelFunction
    (gamma = 1 / (2 sigma^2)) and trained `scales` applied elementwise."""
    x = jnp.asarray(x, jnp.float32)
    y = jnp.asarray(y, jnp.float32)
    m, d = x.shape
    assert y.shape == (m, d), "this estimator assumes same-shaped x and y"

    gamma = 1.0 / (2.0 * sigma * sigma)
    if scales is None:
        sg = jnp.full((d,), jnp.sqrt(gamma), jnp.float32)
    else:
        sg = jnp.asarray(scales, jnp.float32).reshape(d) * jnp.sqrt(gamma)

    # Fold scales, gamma, the factor 2 and the squared norms into augmented
    # operands so each kernel-matrix tile is a single MXU matmul:
    #   A_i . B_j = 2 u_i.u_j - |u_i|^2 - |u_j|^2 = -gamma * d2_ij
    u = x * sg[None, :]
    v = y * sg[None, :]
    nu = jnp.sum(u * u, axis=1, keepdims=True)      # (m, 1)
    nv = jnp.sum(v * v, axis=1, keepdims=True)
    ones = jnp.ones((m, 1), jnp.float32)
    d_aug = d + 2
    d_pad = ((d_aug + 7) // 8) * 8                  # keep the contraction dim 8-aligned

    def aug(main, c_a, c_b):
        cols = [main, c_a, c_b]
        if d_pad > d_aug:
            cols.append(jnp.zeros((m, d_pad - d_aug), jnp.float32))
        return jnp.concatenate(cols, axis=1)

    a_x = aug(2.0 * u, -nu, ones)                   # (m, d_pad)
    a_y = aug(2.0 * v, -nv, ones)
    b_x = aug(u, ones, -nu)
    b_y = aug(v, ones, -nv)

    tm = _pick_tile(m, block_rows)
    tn = _pick_tile(m, block_cols)
    nr, nc = m // tm, m // tn

    partials = pl.pallas_call(
        _mmd_partials_kernel,
        out_shape=jax.ShapeDtypeStruct((m, 8), jnp.float32),
        grid=(nr, nc),
        in_specs=[pl.BlockSpec((tm, d_pad), lambda r, c: (r, 0)),
                  pl.BlockSpec((tm, d_pad), lambda r, c: (r, 0)),
                  pl.BlockSpec((tn, d_pad), lambda r, c: (c, 0)),
                  pl.BlockSpec((tn, d_pad), lambda r, c: (c, 0))],
        out_specs=pl.BlockSpec((tm, 8), lambda r, c: (r, 0)),
        compiler_params=pltpu.CompilerParams(
            dimension_semantics=("parallel", "arbitrary"),
            vmem_limit_bytes=48 * 1024 * 1024),
        cost_estimate=pl.CostEstimate(
            flops=8 * m * m * d_pad + 40 * m * m,
            transcendentals=4 * m * m,
            bytes_accessed=(2 + 2 * nr) * m * d_pad * 4 + m * 8 * 4),
    )(a_x, a_y, b_x, b_y)

    out = pl.pallas_call(
        functools.partial(_mmd_finalize_kernel, m=m, biased=biased,
                          min_var_est=min_var_est),
        out_shape=jax.ShapeDtypeStruct((2,), jnp.float32),
        in_specs=[pl.BlockSpec(memory_space=pltpu.MemorySpace.VMEM)],
        out_specs=pl.BlockSpec(memory_space=pltpu.MemorySpace.SMEM),
    )(partials)
    return out[0], out[1]


def _mmd_reference(x, y, scales, *, sigma=1.0, min_var_est=1e-8):
    """Pure-JAX reference mirroring MMD._mmd2_and_variance (biased, unit diag)."""
    gamma = 1.0 / (2.0 * sigma * sigma)
    rx = x * scales[None, :]
    ry = y * scales[None, :]

    def rbf(a, b):
        d2 = (jnp.sum(a * a, 1)[:, None] + jnp.sum(b * b, 1)[None, :]
              - 2.0 * jnp.matmul(a, b.T, precision=lax.Precision.HIGHEST))
        return jnp.exp(-gamma * jnp.maximum(d2, 0.0))

    k_xx, k_yy, k_xy = rbf(rx, rx), rbf(ry, ry), rbf(rx, ry)
    m = x.shape[0]
    kt_xx_sums = k_xx.sum(1) - 1.0
    kt_yy_sums = k_yy.sum(1) - 1.0
    k_xy_sums_0 = k_xy.sum(0)
    k_xy_sums_1 = k_xy.sum(1)
    kt_xx_sum, kt_yy_sum, k_xy_sum = kt_xx_sums.sum(), kt_yy_sums.sum(), k_xy_sums_0.sum()
    kt_xx_2_sum = (k_xx ** 2).sum() - m
    kt_yy_2_sum = (k_yy ** 2).sum() - m
    k_xy_2_sum = (k_xy ** 2).sum()
    mmd2 = ((kt_xx_sum + m) / (m * m) + (kt_yy_sum + m) / (m * m)
            - 2 * k_xy_sum / (m * m))
    var_est = (2 / (m ** 2 * (m - 1) ** 2)
               * (2 * kt_xx_sums @ kt_xx_sums - kt_xx_2_sum
                  + 2 * kt_yy_sums @ kt_yy_sums - kt_yy_2_sum)
               - (4 * m - 6) / (m ** 3 * (m - 1) ** 3) * (kt_xx_sum ** 2 + kt_yy_sum ** 2)
               + 4 * (m - 2) / (m ** 3 * (m - 1) ** 2)
               * (k_xy_sums_1 @ k_xy_sums_1 + k_xy_sums_0 @ k_xy_sums_0)
               - 4 * (m - 3) / (m ** 3 * (m - 1) ** 2) * k_xy_2_sum
               - (8 * m - 12) / (m ** 5 * (m - 1)) * k_xy_sum ** 2
               + 8 / (m ** 3 * (m - 1))
               * (1 / m * (kt_xx_sum + kt_yy_sum) * k_xy_sum
                  - kt_xx_sums @ k_xy_sums_1 - kt_yy_sums @ k_xy_sums_0))
    ratio = mmd2 / jnp.sqrt(jnp.maximum(var_est, min_var_est))
    return mmd2, ratio


if __name__ == "__main__":
    # 256 samples, 32 features.  Bandwidth is on the scale of the data so the
    # kernel values and the variance estimate are well away from underflow.
    m, d = 256, 32
    sigma = 7.0
    key = jax.random.PRNGKey(0)
    kx, ky = jax.random.split(key)
    x = jax.random.normal(kx, (m, d), jnp.float32)
    y = 1.5 * jax.random.normal(ky, (m, d), jnp.float32) + 1.0   # shifted + rescaled
    scales = jnp.linspace(0.5, 1.5, d, dtype=jnp.float32)        # "trained" scales

    # 128-wide tiles -> a 2x2 grid: exercises the parallel row axis, the
    # column-sweep accumulation and the cross-block diagonal masking.
    mmd2, ratio = mmd_forward(x, y, scales, sigma=sigma, biased=True,
                              block_rows=128, block_cols=128)
    jax.block_until_ready((mmd2, ratio))

    mmd2_ref, ratio_ref = _mmd_reference(x, y, scales, sigma=sigma)
    assert bool(jnp.isfinite(mmd2)) and bool(jnp.isfinite(ratio)), (mmd2, ratio)
    assert jnp.allclose(mmd2, mmd2_ref, rtol=2e-3, atol=1e-6), (mmd2, mmd2_ref)
    assert jnp.allclose(ratio, ratio_ref, rtol=5e-2, atol=1e-3), (ratio, ratio_ref)

    print("KERNEL_OK")
</pallas_src>

<mosaic_0001>
module attributes {stable_mosaic.version = 11 : i64} {
  func.func @_mmd_partials_kernel(%arg0: i32, %arg1: i32, %arg2: memref<128x40xf32, #tpu.memory_space<vmem>>, %arg3: memref<128x40xf32, #tpu.memory_space<vmem>>, %arg4: memref<128x40xf32, #tpu.memory_space<vmem>>, %arg5: memref<128x40xf32, #tpu.memory_space<vmem>>, %arg6: memref<128x8xf32, #tpu.memory_space<vmem>>) attributes {dimension_semantics = [#tpu.dimension_semantics<parallel>, #tpu.dimension_semantics<arbitrary>], iteration_bounds = array<i64: 2, 2>, scalar_prefetch = 0 : i64, scratch_operands = 0 : i64, tpu.core_type = #tpu.core_type<tc>, window_params = [{transform_indices = @transform_0, window_bounds = array<i64: 128, 40>}, {transform_indices = @transform_1, window_bounds = array<i64: 128, 40>}, {transform_indices = @transform_2, window_bounds = array<i64: 128, 40>}, {transform_indices = @transform_3, window_bounds = array<i64: 128, 40>}, {transform_indices = @transform_4, window_bounds = array<i64: 128, 8>}]} {
    %c0 = arith.constant 0 : index
    %c0_0 = arith.constant 0 : index
    %0 = vector.load %arg2[%c0, %c0_0] : memref<128x40xf32, #tpu.memory_space<vmem>>, vector<128x40xf32>
    %c0_1 = arith.constant 0 : index
    %c0_2 = arith.constant 0 : index
    %1 = vector.load %arg3[%c0_1, %c0_2] : memref<128x40xf32, #tpu.memory_space<vmem>>, vector<128x40xf32>
    %c0_3 = arith.constant 0 : index
    %c0_4 = arith.constant 0 : index
    %2 = vector.load %arg4[%c0_3, %c0_4] : memref<128x40xf32, #tpu.memory_space<vmem>>, vector<128x40xf32>
    %c0_5 = arith.constant 0 : index
    %c0_6 = arith.constant 0 : index
    %3 = vector.load %arg5[%c0_5, %c0_6] : memref<128x40xf32, #tpu.memory_space<vmem>>, vector<128x40xf32>
    %cst = arith.constant dense<0.000000e+00> : vector<128x128xf32>
    %4 = tpu.matmul %0, %3, %cst {dimension_numbers = #tpu.dot_dimension_numbers<[1], [1], [0], [0], [0, 0, 1, 0], [], []>} : vector<128x40xf32>, vector<128x40xf32>, vector<128x128xf32> -> vector<128x128xf32>
    %cst_7 = arith.constant 0.000000e+00 : f32
    %5 = vector.broadcast %cst_7 : f32 to vector<128x128xf32>
    %6 = arith.minimumf %4, %5 : vector<128x128xf32>
    %7 = math.exp %6 : vector<128x128xf32>
    %cst_8 = arith.constant dense<0.000000e+00> : vector<128x128xf32>
    %8 = tpu.matmul %1, %2, %cst_8 {dimension_numbers = #tpu.dot_dimension_numbers<[1], [1], [0], [0], [0, 0, 1, 0], [], []>} : vector<128x40xf32>, vector<128x40xf32>, vector<128x128xf32> -> vector<128x128xf32>
    %cst_9 = arith.constant 0.000000e+00 : f32
    %9 = vector.broadcast %cst_9 : f32 to vector<128x128xf32>
    %10 = arith.minimumf %8, %9 : vector<128x128xf32>
    %11 = math.exp %10 : vector<128x128xf32>
    %cst_10 = arith.constant dense<0.000000e+00> : vector<128x128xf32>
    %12 = tpu.matmul %0, %2, %cst_10 {dimension_numbers = #tpu.dot_dimension_numbers<[1], [1], [0], [0], [0, 0, 1, 0], [], []>} : vector<128x40xf32>, vector<128x40xf32>, vector<128x128xf32> -> vector<128x128xf32>
    %cst_11 = arith.constant 0.000000e+00 : f32
    %13 = vector.broadcast %cst_11 : f32 to vector<128x128xf32>
    %14 = arith.minimumf %12, %13 : vector<128x128xf32>
    %15 = math.exp %14 : vector<128x128xf32>
    %cst_12 = arith.constant dense<0.000000e+00> : vector<128x128xf32>
    %16 = tpu.matmul %1, %3, %cst_12 {dimension_numbers = #tpu.dot_dimension_numbers<[1], [1], [0], [0], [0, 0, 1, 0], [], []>} : vector<128x40xf32>, vector<128x40xf32>, vector<128x128xf32> -> vector<128x128xf32>
    %cst_13 = arith.constant 0.000000e+00 : f32
    %17 = vector.broadcast %cst_13 : f32 to vector<128x128xf32>
    %18 = arith.minimumf %16, %17 : vector<128x128xf32>
    %19 = math.exp %18 : vector<128x128xf32>
    %c128_i32 = arith.constant 128 : i32
    %20 = arith.muli %arg0, %c128_i32 : i32
    %21 = tpu.iota {dimensions = array<i32: 0>} : vector<128x128xi32>
    %22 = vector.broadcast %20 : i32 to vector<128x128xi32>
    %23 = arith.addi %22, %21 : vector<128x128xi32>
    %c128_i32_14 = arith.constant 128 : i32
    %24 = arith.muli %arg1, %c128_i32_14 : i32
    %25 = tpu.iota {dimensions = array<i32: 1>} : vector<128x128xi32>
    %26 = vector.broadcast %24 : i32 to vector<128x128xi32>
    %27 = arith.addi %26, %25 : vector<128x128xi32>
    %28 = arith.cmpi eq, %23, %27 : vector<128x128xi32>
    %cst_15 = arith.constant 1.000000e+00 : f32
    %29 = vector.broadcast %cst_15 : f32 to vector<128x128xf32>
    %30 = arith.select %28, %29, %15 : vector<128x128xi1>, vector<128x128xf32>
    %cst_16 = arith.constant 1.000000e+00 : f32
    %31 = vector.broadcast %cst_16 : f32 to vector<128x128xf32>
    %32 = arith.select %28, %31, %19 : vector<128x128xi1>, vector<128x128xf32>
    %cst_17 = arith.constant dense<0.000000e+00> : vector<128xf32>
    %33 = vector.multi_reduction <add>, %30, %cst_17 [1] : vector<128x128xf32> to vector<128xf32>
    %34 = vector.shape_cast %33 : vector<128xf32> to vector<128x1xf32>
    %cst_18 = arith.constant dense<0.000000e+00> : vector<128xf32>
    %35 = vector.multi_reduction <add>, %32, %cst_18 [1] : vector<128x128xf32> to vector<128xf32>
    %36 = vector.shape_cast %35 : vector<128xf32> to vector<128x1xf32>
    %cst_19 = arith.constant dense<0.000000e+00> : vector<128xf32>
    %37 = vector.multi_reduction <add>, %7, %cst_19 [1] : vector<128x128xf32> to vector<128xf32>
    %38 = vector.shape_cast %37 : vector<128xf32> to vector<128x1xf32>
    %cst_20 = arith.constant dense<0.000000e+00> : vector<128xf32>
    %39 = vector.multi_reduction <add>, %11, %cst_20 [1] : vector<128x128xf32> to vector<128xf32>
    %40 = vector.shape_cast %39 : vector<128xf32> to vector<128x1xf32>
    %41 = arith.mulf %30, %30 : vector<128x128xf32>
    %cst_21 = arith.constant dense<0.000000e+00> : vector<128xf32>
    %42 = vector.multi_reduction <add>, %41, %cst_21 [1] : vector<128x128xf32> to vector<128xf32>
    %43 = vector.shape_cast %42 : vector<128xf32> to vector<128x1xf32>
    %44 = arith.mulf %32, %32 : vector<128x128xf32>
    %cst_22 = arith.constant dense<0.000000e+00> : vector<128xf32>
    %45 = vector.multi_reduction <add>, %44, %cst_22 [1] : vector<128x128xf32> to vector<128xf32>
    %46 = vector.shape_cast %45 : vector<128xf32> to vector<128x1xf32>
    %47 = arith.mulf %7, %7 : vector<128x128xf32>
    %cst_23 = arith.constant dense<0.000000e+00> : vector<128xf32>
    %48 = vector.multi_reduction <add>, %47, %cst_23 [1] : vector<128x128xf32> to vector<128xf32>
    %49 = vector.shape_cast %48 : vector<128xf32> to vector<128x1xf32>
    %cst_24 = arith.constant 0.000000e+00 : f32
    %50 = vector.broadcast %cst_24 : f32 to vector<128x1xf32>
    %51 = tpu.concatenate %34, %36, %38, %40, %43, %46, %49, %50 in 1 : vector<128x1xf32>, vector<128x1xf32>, vector<128x1xf32>, vector<128x1xf32>, vector<128x1xf32>, vector<128x1xf32>, vector<128x1xf32>, vector<128x1xf32> -> vector<128x8xf32>
    %c0_i32 = arith.constant 0 : i32
    %52 = arith.cmpi eq, %arg1, %c0_i32 : i32
    %53 = arith.extui %52 : i1 to i32
    %c0_i32_25 = arith.constant 0 : i32
    %54 = arith.cmpi ne, %53, %c0_i32_25 : i32
    scf.if %54 {
      %cst_30 = arith.constant 0.000000e+00 : f32
      %58 = vector.broadcast %cst_30 : f32 to vector<128x8xf32>
      %c0_31 = arith.constant 0 : index
      %c0_32 = arith.constant 0 : index
      %59 = vector.load %arg6[%c0_31, %c0_32] : memref<128x8xf32, #tpu.memory_space<vmem>>, vector<128x8xf32>
      tpu.vector_store %arg6[%c0_31, %c0_32], %58 {strides = array<i32>} : memref<128x8xf32, #tpu.memory_space<vmem>>, vector<128x8xf32>,
    } else {
    }
    %c0_26 = arith.constant 0 : index
    %c0_27 = arith.constant 0 : index
    %55 = vector.load %arg6[%c0_26, %c0_27] : memref<128x8xf32, #tpu.memory_space<vmem>>, vector<128x8xf32>
    %56 = arith.addf %55, %51 : vector<128x8xf32>
    %c0_28 = arith.constant 0 : index
    %c0_29 = arith.constant 0 : index
    %57 = vector.load %arg6[%c0_28, %c0_29] : memref<128x8xf32, #tpu.memory_space<vmem>>, vector<128x8xf32>
    tpu.vector_store %arg6[%c0_28, %c0_29], %56 {strides = array<i32>} : memref<128x8xf32, #tpu.memory_space<vmem>>, vector<128x8xf32>,
    return
  }
  func.func @transform_0(%arg0: i32, %arg1: i32) -> (i32, i32) {
    %c0_i32 = arith.constant 0 : i32
    %c0_i32_0 = arith.constant 0 : i32
    return %arg0, %c0_i32 : i32, i32
  }
  func.func @transform_1(%arg0: i32, %arg1: i32) -> (i32, i32) {
    %c0_i32 = arith.constant 0 : i32
    %c0_i32_0 = arith.constant 0 : i32
    return %arg0, %c0_i32 : i32, i32
  }
  func.func @transform_2(%arg0: i32, %arg1: i32) -> (i32, i32) {
    %c0_i32 = arith.constant 0 : i32
    %c0_i32_0 = arith.constant 0 : i32
    return %arg1, %c0_i32 : i32, i32
  }
  func.func @transform_3(%arg0: i32, %arg1: i32) -> (i32, i32) {
    %c0_i32 = arith.constant 0 : i32
    %c0_i32_0 = arith.constant 0 : i32
    return %arg1, %c0_i32 : i32, i32
  }
  func.func @transform_4(%arg0: i32, %arg1: i32) -> (i32, i32) {
    %c0_i32 = arith.constant 0 : i32
    %c0_i32_0 = arith.constant 0 : i32
    return %arg0, %c0_i32 : i32, i32
  }
}

</mosaic_0001>

<bundles_post_ra>
// kernel: tpu_custom_call.1
= control target key start
LH: loop header
LB: loop body
LE: loop exit
PB: predicated region body
PF: predicated region fallthrough
CT: control target
= control target key end

     0   :  { %s2888_s15 = smov 0   ;;  %s2890_s16 = smov 0   ;;  %s4061_s0 = inlined_call_operand.vmem [shape: f32[256,40], index: 0, kind: input, shape index: {}]   ;;  %s4062_s1 = inlined_call_operand.vmem [shape: f32[256,40], index: 1, kind: input, shape index: {}]   ;;  %s4063_s2 = inlined_call_operand.vmem [shape: f32[256,40], index: 2, kind: input, shape index: {}]   ;;  %s4064_s3 = inlined_call_operand.vmem [shape: f32[256,40], index: 3, kind: input, shape index: {}]   ;;  %s4065_s4 = inlined_call_operand.vmem [shape: f32[256,8], index: 4, kind: output, shape index: {}]  }
   0x1   :  { %s2892_s17 = smov 0   ;;  %s2894_s18 = smov 0  }
   0x2   :  { %s2896_s19 = smov 0  }
   0x3 LB: > { %s23_s20 = sadd.s32 1, %s2852_s17  ;;  %s26_s21 = sadd.s32 1, %s2856_s18  ;;  %s2860_s19 = sphi %s2896_s19, %s14_s19   ;;  %s2856_s18 = sphi %s2894_s18, %s4071_s18   ;;  %s2852_s17 = sphi %s2892_s17, %s4070_s17   ;;  %s2848_s16 = sphi %s2890_s16, %s4069_s16   ;;  %s2844_s15 = sphi %s2888_s15, %s4068_s15  }
   0x4   : > { %p24_p0 = scmp.ge.s32.totalorder %s23_s20, 2  ;;  %p1965_p1 = scmp.ge.s32.totalorder %s2860_s19, 1 }
   0x5   : > { %p208_p2 = scmp.lt.s32.totalorder %s2860_s19, 5 }
   0x6   : > { %s4073_s20 = smov (%p24_p0, %s23_s20), 0  ;;  %s4075_s21 = smov (!%p24_p0, %s26_s21), %s2856_s18 }
   0x7   : > { %p209_p3 = pnand %p1965_p1, %p208_p2  ;;  %p28_p4 = scmp.ge.s32.totalorder %s4075_s21, 2 }
   0x8   : > { %s1970_s22 = sshll.u32 (!%p209_p3), %s2844_s15, 4  ;;  %s1966_s23 = sshll.u32 (!%p209_p3), %s2848_s16, 4  ;;  %vm343_vm0 = vcmask (!%p209_p3), 326656  }
   0x9   : > { %s4077_s21 = smov (%p28_p4, %s4075_s21), 0  ;;  %212 = sbr.rel (%p209_p3) target bundleno = 689 (0x2b1), region = 36 }
   0xa   : > { %p262_p5 = scmp.lt.s32.totalorder (!%p209_p3), %s1970_s22, 31  ;;  %p250_p6 = scmp.lt.s32.totalorder (!%p209_p3), %s1966_s23, 31  ;;  %vm2931_vm1 = vmpackc.low (!%p209_p3), %vm343_vm0, %vm343_vm0 }
   0xb   : > { %p2106_p7 = scmp.ne.s32.totalorder (!%p209_p3), %s2844_s15, 0 }
  0x10   : > { %s4079_s22 = smov (!%p262_p5, %s1970_s22), 31  ;;  %s4081_s23 = smov (!%p250_p6, %s1966_s23), 31 }
  0x11   : > { %s1971_s24 = sshll.u32 %s4079_s22, 3  ;;  %s1967_s5 = sshll.u32 %s4081_s23, 3 }
  0x12   : > { %s2927_s27 = scalar_lea.vmem %s4064_s3, %s1971_s24  ;;  %s2938_s30 = scalar_lea.vmem %s4063_s2, %s1971_s24 }
  0x13   : > { %v327_v1 = vld [vmem:[%s2927_s27] sm:$0xff]  ;;  %v328_v2 = vld [vmem:[%s2927_s27 + $0x8] sm:$0xff]  ;;  %v329_v6 = vld [vmem:[%s2927_s27 + $0x10] sm:$0xff]  ;;  %s2951_s8 = scalar_lea.vmem %s4065_s4, %s1967_s5  ;;  %s2986_s11 = scalar_lea.vmem %s4061_s0, %s1967_s5 }
  0x14   : > { %v311_v3 = vld [vmem:[%s2938_s30] sm:$0xff]  ;;  %v2943_v4 = vpack.c.bf16 %v328_v2, %v327_v1  ;;  %v312_v5 = vld [vmem:[%s2938_s30 + $0x8] sm:$0xff]  ;;  %v330_v7 = vld [vmem:[%s2927_s27 + $0x18] sm:$0xff]  ;;  %s2991_s14 = scalar_lea.vmem %s4062_s1, %s1967_s5  ;;  %s2104_s22 = sshll.u32 %s2848_s16, 7 }
  0x15   : > { %v2953_v8 = vpack.c.bf16 %v312_v5, %v311_v3  ;;  %v2955_v9 = vpack.c.bf16 %v330_v7, %v329_v6  ;;  %v313_v10 = vld [vmem:[%s2938_s30 + $0x10] sm:$0xff]  ;;  %v314_v11 = vld [vmem:[%s2938_s30 + $0x18] sm:$0xff]  ;;  %v331_v13 = vld [vmem:[%s2927_s27 + $0x20] sm:$0xff]  ;;  %s2105_s23 = sshll.u32 %s2844_s15, 7 }
  0x16   : > { %2463 = vmatprep.subr.msk.bf16.mxu0 %vm2931_vm1, %v2943_v4  ;;  %v2962_v12 = vpack.c.bf16 %v314_v11, %v313_v10  ;;  %v332_v14 = vld [vmem:[%s2927_s27 + $0x28] sm:$0xff]  ;;  %v315_v15 = vld [vmem:[%s2938_s30 + $0x20] sm:$0xff]  ;;  %v333_v21 = vld [vmem:[%s2927_s27 + $0x30] sm:$0xff] }
  0x17   : > { %2466 = vmatpush3.bf16.xpose.msk.msra.mxu0 %vm2931_vm1, %v2943_v4  ;;  %2511 = vmatprep.subr.msk.bf16.mxu1 %vm2931_vm1, %v2953_v8  ;;  %v316_v16 = vld [vmem:[%s2938_s30 + $0x28] sm:$0xff]  ;;  %v2993_v17 = vpack.c.bf16 %v332_v14, %v331_v13  ;;  %v2998_v19 = vld [vmem:[%s2986_s11] sm:$0xff]  ;;  %v334_v22 = vld [vmem:[%s2927_s27 + $0x38] sm:$0xff] }
  0x18   : > { %2514 = vmatpush3.bf16.xpose.msk.msra.mxu1 %vm2931_vm1, %v2953_v8  ;;  %2469 = vmatprep.subr.msk.bf16.mxu0 %vm2931_vm1, %v2955_v9  ;;  %v2995_v18 = vpack.c.bf16 %v316_v16, %v315_v15  ;;  %v3003_v20 = vld [vmem:[%s2991_s14] sm:$0xff]  ;;  %v317_v23 = vld [vmem:[%s2938_s30 + $0x30] sm:$0xff]  ;;  %v318_v24 = vld [vmem:[%s2938_s30 + $0x38] sm:$0xff]  ;;  %v3023_v25 = vpack.c.bf16 %v334_v22, %v333_v21 }
  0x19   : > { %2517 = vmatprep.subr.msk.bf16.mxu1 %vm2931_vm1, %v2962_v12  ;;  %2269 = vmatprep.mubr.msk.f32.mxu0 %vm343_vm0, %v2998_v19  ;;  %v3025_v26 = vpack.c.bf16 %v318_v24, %v317_v23  ;;  %v335_v27 = vld [vmem:[%s2927_s27 + $0x40] sm:$0xff]  ;;  %v336_v28 = vld [vmem:[%s2927_s27 + $0x48] sm:$0xff]  ;;  %v337_v33 = vld [vmem:[%s2927_s27 + $0x50] sm:$0xff] }
  0x1a   : > { %2325 = vmatprep.mubr.msk.f32.mxu1 %vm343_vm0, %v3003_v20  ;;  %v319_v29 = vld [vmem:[%s2938_s30 + $0x40] sm:$0xff]  ;;  %v320_v30 = vld [vmem:[%s2938_s30 + $0x48] sm:$0xff]  ;;  %v3043_v31 = vpack.c.bf16 %v336_v28, %v335_v27  ;;  %v338_v34 = vld [vmem:[%s2927_s27 + $0x58] sm:$0xff] }
  0x1b   : > { %v3045_v32 = vpack.c.bf16 %v320_v30, %v319_v29  ;;  %v321_v35 = vld [vmem:[%s2938_s30 + $0x50] sm:$0xff]  ;;  %v322_v36 = vld [vmem:[%s2938_s30 + $0x58] sm:$0xff]  ;;  %v3063_v37 = vpack.c.bf16 %v338_v34, %v337_v33  ;;  %v339_v39 = vld [vmem:[%s2927_s27 + $0x60] sm:$0xff] }
  0x1c   : > { %v3065_v38 = vpack.c.bf16 %v322_v36, %v321_v35  ;;  %v340_v40 = vld [vmem:[%s2927_s27 + $0x68] sm:$0xff]  ;;  %v323_v41 = vld [vmem:[%s2938_s30 + $0x60] sm:$0xff]  ;;  %v341_v45 = vld [vmem:[%s2927_s27 + $0x70] sm:$0xff] }
  0x1d   : > { %v324_v42 = vld [vmem:[%s2938_s30 + $0x68] sm:$0xff]  ;;  %v3083_v43 = vpack.c.bf16 %v340_v40, %v339_v39  ;;  %v342_v46 = vld [vmem:[%s2927_s27 + $0x78] sm:$0xff]  ;;  %v325_v47 = vld [vmem:[%s2938_s30 + $0x70] sm:$0xff] }
  0x1e   : > { %v3085_v44 = vpack.c.bf16 %v324_v42, %v323_v41  ;;  %v326_v48 = vld [vmem:[%s2938_s30 + $0x78] sm:$0xff]  ;;  %v3103_v49 = vpack.c.bf16 %v342_v46, %v341_v45  ;;  %v3132_v51 = vld [vmem:[%s2986_s11 + $0x8] sm:$0xff]  ;;  %v3138_v53 = vld [vmem:[%s2986_s11 + $0x10] sm:$0xff] }
  0x1f   : > { %2472 = vmatpush3.bf16.xpose.msk.msra.mxu0 %vm2931_vm1, %v2955_v9  ;;  %v3105_v50 = vpack.c.bf16 %v326_v48, %v325_v47  ;;  %v3135_v52 = vld [vmem:[%s2991_s14 + $0x8] sm:$0xff]  ;;  %v3141_v54 = vld [vmem:[%s2991_s14 + $0x10] sm:$0xff]  ;;  %v3150_v55 = vld [vmem:[%s2986_s11 + $0x18] sm:$0xff] }
  0x20   : > { %2520 = vmatpush3.bf16.xpose.msk.msra.mxu1 %vm2931_vm1, %v2962_v12  ;;  %2475 = vmatprep.subr.msk.bf16.mxu0 %vm2931_vm1, %v2993_v17  ;;  %v3155_v56 = vld [vmem:[%s2991_s14 + $0x18] sm:$0xff]  ;;  %v3158_v57 = vld [vmem:[%s2986_s11 + $0x20] sm:$0xff]  ;;  %v3182_v59 = vld [vmem:[%s2986_s11 + $0x28] sm:$0xff] }
  0x21   : > { %2523 = vmatprep.subr.msk.bf16.mxu1 %vm2931_vm1, %v2995_v18  ;;  %v3164_v58 = vld [vmem:[%s2991_s14 + $0x20] sm:$0xff]  ;;  %v3187_v60 = vld [vmem:[%s2991_s14 + $0x28] sm:$0xff]  ;;  %v3190_v61 = vld [vmem:[%s2986_s11 + $0x30] sm:$0xff] }
  0x22   : > { %v3193_v62 = vld [vmem:[%s2991_s14 + $0x30] sm:$0xff]  ;;  %v3202_v63 = vld [vmem:[%s2986_s11 + $0x38] sm:$0xff]  ;;  %v3213_v2 = vld [vmem:[%s2986_s11 + $0x40] sm:$0xff] }
  0x23   : > { %v3210_v1 = vld [vmem:[%s2991_s14 + $0x38] sm:$0xff]  ;;  %v3222_v3 = vld [vmem:[%s2991_s14 + $0x40] sm:$0xff]  ;;  %v3239_v5 = vld [vmem:[%s2991_s14 + $0x48] sm:$0xff] }
  0x24   : > { %v3242_v6 = vld [vmem:[%s2986_s11 + $0x50] sm:$0xff]  ;;  %v3265_v10 = vld [vmem:[%s2986_s11 + $0x60] sm:$0xff]  ;;  %v308_v13 = vld [vmem:[%s2991_s14 + $0x68] sm:$0xff] }
  0x25   : > { %v3245_v7 = vld [vmem:[%s2991_s14 + $0x50] sm:$0xff]  ;;  %v307_v11 = vld [vmem:[%s2991_s14 + $0x60] sm:$0xff]  ;;  %v294_v16 = vld [vmem:[%s2986_s11 + $0x78] sm:$0xff] }
  0x26   : > { %v293_v14 = vld [vmem:[%s2986_s11 + $0x70] sm:$0xff] }
  0x27   : > { %2478 = vmatpush3.bf16.xpose.msk.msra.mxu0 %vm2931_vm1, %v2993_v17  ;;  %v309_v15 = vld [vmem:[%s2991_s14 + $0x70] sm:$0xff] }
  0x28   : > { %2526 = vmatpush3.bf16.xpose.msk.msra.mxu1 %vm2931_vm1, %v2995_v18  ;;  %2481 = vmatprep.subr.msk.bf16.mxu0 %vm2931_vm1, %v3023_v25 }
  0x29   : > { %2529 = vmatprep.subr.msk.bf16.mxu1 %vm2931_vm1, %v3025_v26 }
  0x2f   : > { %2484 = vmatpush3.bf16.xpose.msk.msra.mxu0 %vm2931_vm1, %v3023_v25 }
  0x30   : > { %2532 = vmatpush3.bf16.xpose.msk.msra.mxu1 %vm2931_vm1, %v3025_v26  ;;  %2487 = vmatprep.subr.msk.bf16.mxu0 %vm2931_vm1, %v3043_v31 }
  0x31   : > { %2535 = vmatprep.subr.msk.bf16.mxu1 %vm2931_vm1, %v3045_v32 }
  0x37   : > { %2490 = vmatpush3.bf16.xpose.msk.msra.mxu0 %vm2931_vm1, %v3043_v31 }
  0x38   : > { %2538 = vmatpush3.bf16.xpose.msk.msra.mxu1 %vm2931_vm1, %v3045_v32  ;;  %2493 = vmatprep.subr.msk.bf16.mxu0 %vm2931_vm1, %v3063_v37 }
  0x39   : > { %2541 = vmatprep.subr.msk.bf16.mxu1 %vm2931_vm1, %v3065_v38 }
  0x3f   : > { %2496 = vmatpush3.bf16.xpose.msk.msra.mxu0 %vm2931_vm1, %v3063_v37 }
  0x40   : > { %2544 = vmatpush3.bf16.xpose.msk.msra.mxu1 %vm2931_vm1, %v3065_v38  ;;  %2499 = vmatprep.subr.msk.bf16.mxu0 %vm2931_vm1, %v3083_v43 }
  0x41   : > { %2547 = vmatprep.subr.msk.bf16.mxu1 %vm2931_vm1, %v3085_v44 }
  0x47   : > { %2502 = vmatpush3.bf16.xpose.msk.msra.mxu0 %vm2931_vm1, %v3083_v43 }
  0x48   : > { %2550 = vmatpush3.bf16.xpose.msk.msra.mxu1 %vm2931_vm1, %v3085_v44  ;;  %2505 = vmatprep.subr.msk.bf16.mxu0 %vm2931_vm1, %v3103_v49 }
  0x49   : > { %2553 = vmatprep.subr.msk.bf16.mxu1 %vm2931_vm1, %v3105_v50 }
  0x4f   : > { %2508 = vmatpush3.bf16.xpose.msk.msra.mxu0 %vm2931_vm1, %v3103_v49 }
  0x50   : > { %2556 = vmatpush3.bf16.xpose.msk.msra.mxu1 %vm2931_vm1, %v3105_v50  ;;  %2559 = vmatprep.subr.msk.bf16.mxu0 %vm2931_vm1, %v2953_v8 }
  0x51   : > { %2607 = vmatprep.subr.msk.bf16.mxu1 %vm2931_vm1, %v2943_v4 }
  0x56   : > { %2270 = vmatmul.mubr.msk.f32.vlgmr.msra.gmra.mrb[0].mxu0 %vm343_vm0, %v3132_v51 }
  0x57   : > { %2326 = vmatmul.mubr.msk.f32.vlgmr.msra.gmra.mrb[0].mxu1 %vm343_vm0, %v3135_v52  ;;  %2272 = vmatprep.mubr.msk.f32.mxu0 %vm343_vm0, %v3138_v53 }
  0x58   : > { %2328 = vmatprep.mubr.msk.f32.mxu1 %vm343_vm0, %v3141_v54  ;;  %2562 = vmatpush3.bf16.xpose.msk.msra.mxu0 %vm2931_vm1, %v2953_v8  ;;  %v3254_v8 = vld [vmem:[%s2986_s11 + $0x58] sm:$0xff] }
  0x59   : > { %2610 = vmatpush3.bf16.xpose.msk.msra.mxu1 %vm2931_vm1, %v2943_v4  ;;  %2565 = vmatprep.subr.msk.bf16.mxu0 %vm2931_vm1, %v2962_v12  ;;  %v3234_v4 = vld [vmem:[%s2986_s11 + $0x48] sm:$0xff] }
  0x5a   : > { %2273 = vmatmul.mubr.msk.f32.gmra.mrb[2].mxu0 %vm343_vm0, %v3150_v55  ;;  %2613 = vmatprep.subr.msk.bf16.mxu1 %vm2931_vm1, %v2955_v9 }
  0x5b   : > { %2329 = vmatmul.mubr.msk.f32.gmra.mrb[2].mxu1 %vm343_vm0, %v3155_v56  ;;  %2275 = vmatprep.mubr.msk.f32.mxu0 %vm343_vm0, %v3158_v57 }
  0x5c   : > { %2331 = vmatprep.mubr.msk.f32.mxu1 %vm343_vm0, %v3164_v58 }
  0x5e   : > { %2276 = vmatmul.mubr.msk.f32.gmra.mrb[4].mxu0 %vm343_vm0, %v3182_v59 }
  0x5f   : > { %2332 = vmatmul.mubr.msk.f32.gmra.mrb[4].mxu1 %vm343_vm0, %v3187_v60  ;;  %2278 = vmatprep.mubr.msk.f32.mxu0 %vm343_vm0, %v3190_v61 }
  0x60   : > { %2568 = vmatpush3.bf16.xpose.msk.msra.mxu0 %vm2931_vm1, %v2962_v12  ;;  %2334 = vmatprep.mubr.msk.f32.mxu1 %vm343_vm0, %v3193_v62  ;;  %v292_v12 = vld [vmem:[%s2986_s11 + $0x68] sm:$0xff] }
  0x61   : > { %2616 = vmatpush3.bf16.xpose.msk.msra.mxu1 %vm2931_vm1, %v2955_v9  ;;  %2571 = vmatprep.subr.msk.bf16.mxu0 %vm2931_vm1, %v2995_v18  ;;  %v3262_v9 = vld [vmem:[%s2991_s14 + $0x58] sm:$0xff] }
  0x62   : > { %2279 = vmatmul.mubr.msk.f32.gmra.mrb[6].mxu0 %vm343_vm0, %v3202_v63  ;;  %2619 = vmatprep.subr.msk.bf16.mxu1 %vm2931_vm1, %v2993_v17 }
  0x63   : > { %2335 = vmatmul.mubr.msk.f32.gmra.mrb[6].mxu1 %vm343_vm0, %v3210_v1  ;;  %2281 = vmatprep.mubr.msk.f32.mxu0 %vm343_vm0, %v3213_v2 }
  0x64   : > { %2337 = vmatprep.mubr.msk.f32.mxu1 %vm343_vm0, %v3222_v3 }
  0x66   : > { %2282 = vmatmul.mubr.msk.f32.gmra.mrb[8].mxu0 %vm343_vm0, %v3234_v4 }
  0x67   : > { %2338 = vmatmul.mubr.msk.f32.gmra.mrb[8].mxu1 %vm343_vm0, %v3239_v5  ;;  %2284 = vmatprep.mubr.msk.f32.mxu0 %vm343_vm0, %v3242_v6 }
  0x68   : > { %2574 = vmatpush3.bf16.xpose.msk.msra.mxu0 %vm2931_vm1, %v2995_v18  ;;  %2340 = vmatprep.mubr.msk.f32.mxu1 %vm343_vm0, %v3245_v7 }
  0x69   : > { %2622 = vmatpush3.bf16.xpose.msk.msra.mxu1 %vm2931_vm1, %v2993_v17  ;;  %2577 = vmatprep.subr.msk.bf16.mxu0 %vm2931_vm1, %v3025_v26  ;;  %v310_v17 = vld [vmem:[%s2991_s14 + $0x78] sm:$0xff] }
  0x6a   : > { %2625 = vmatprep.subr.msk.bf16.mxu1 %vm2931_vm1, %v3023_v25  ;;  %2285 = vmatmul.mubr.msk.f32.gmra.mrb[10].mxu0 %vm343_vm0, %v3254_v8 }
  0x6b   : > { %2341 = vmatmul.mubr.msk.f32.gmra.mrb[10].mxu1 %vm343_vm0, %v3262_v9  ;;  %2287 = vmatprep.mubr.msk.f32.mxu0 %vm343_vm0, %v3265_v10 }
  0x6c   : > { %2343 = vmatprep.mubr.msk.f32.mxu1 %vm343_vm0, %v307_v11 }
  0x6e   : > { %2288 = vmatmul.mubr.msk.f32.gmra.mrb[12].mxu0 %vm343_vm0, %v292_v12 }
  0x6f   : > { %2344 = vmatmul.mubr.msk.f32.gmra.mrb[12].mxu1 %vm343_vm0, %v308_v13  ;;  %2290 = vmatprep.mubr.msk.f32.mxu0 %vm343_vm0, %v293_v14 }
  0x70   : > { %2580 = vmatpush3.bf16.xpose.msk.msra.mxu0 %vm2931_vm1, %v3025_v26  ;;  %2346 = vmatprep.mubr.msk.f32.mxu1 %vm343_vm0, %v309_v15 }
  0x71   : > { %2628 = vmatpush3.bf16.xpose.msk.msra.mxu1 %vm2931_vm1, %v3023_v25  ;;  %2583 = vmatprep.subr.msk.bf16.mxu0 %vm2931_vm1, %v3045_v32 }
  0x72   : > { %2631 = vmatprep.subr.msk.bf16.mxu1 %vm2931_vm1, %v3043_v31  ;;  %2291 = vmatmul.mubr.msk.f32.gmra.mrb[14].mxu0 %vm343_vm0, %v294_v16 }
  0x73   : > { %2347 = vmatmul.mubr.msk.f32.gmra.mrb[14].mxu1 %vm343_vm0, %v310_v17  ;;  %2381 = vmatprep.mubr.msk.f32.mxu0 %vm343_vm0, %v2998_v19 }
  0x74   : > { %2437 = vmatprep.mubr.msk.f32.mxu1 %vm343_vm0, %v3003_v20 }
  0x78   : > { %2586 = vmatpush3.bf16.xpose.msk.msra.mxu0 %vm2931_vm1, %v3045_v32 }
  0x79   : > { %2634 = vmatpush3.bf16.xpose.msk.msra.mxu1 %vm2931_vm1, %v3043_v31  ;;  %2589 = vmatprep.subr.msk.bf16.mxu0 %vm2931_vm1, %v3065_v38 }
  0x7a   : > { %2637 = vmatprep.subr.msk.bf16.mxu1 %vm2931_vm1, %v3063_v37 }
  0x80   : > { %2592 = vmatpush3.bf16.xpose.msk.msra.mxu0 %vm2931_vm1, %v3065_v38 }
  0x81   : > { %2640 = vmatpush3.bf16.xpose.msk.msra.mxu1 %vm2931_vm1, %v3063_v37  ;;  %2595 = vmatprep.subr.msk.bf16.mxu0 %vm2931_vm1, %v3085_v44 }
  0x82   : > { %2643 = vmatprep.subr.msk.bf16.mxu1 %vm2931_vm1, %v3083_v43 }
  0x88   : > { %2598 = vmatpush3.bf16.xpose.msk.msra.mxu0 %vm2931_vm1, %v3085_v44 }
  0x89   : > { %2646 = vmatpush3.bf16.xpose.msk.msra.mxu1 %vm2931_vm1, %v3083_v43  ;;  %2601 = vmatprep.subr.msk.bf16.mxu0 %vm2931_vm1, %v3105_v50 }
  0x8a   : > { %2649 = vmatprep.subr.msk.bf16.mxu1 %vm2931_vm1, %v3103_v49 }
  0x90   : > { %2604 = vmatpush3.bf16.xpose.msk.msra.mxu0 %vm2931_vm1, %v3105_v50 }
  0x91   : > { %2652 = vmatpush3.bf16.xpose.msk.msra.mxu1 %vm2931_vm1, %v3103_v49 }
  0x97   : > { %2382 = vmatmul.mubr.msk.f32.vlgmr.msra.gmra.mrb[16].mxu0 %vm343_vm0, %v3132_v51 }
  0x98   : > { %2438 = vmatmul.mubr.msk.f32.vlgmr.msra.gmra.mrb[16].mxu1 %vm343_vm0, %v3135_v52  ;;  %2384 = vmatprep.mubr.msk.f32.mxu0 %vm343_vm0, %v3138_v53 }
  0x99   : > { %2440 = vmatprep.mubr.msk.f32.mxu1 %vm343_vm0, %v3141_v54 }
  0x9b   : > { %2385 = vmatmul.mubr.msk.f32.gmra.mrb[18].mxu0 %vm343_vm0, %v3150_v55 }
  0x9c   : > { %2441 = vmatmul.mubr.msk.f32.gmra.mrb[18].mxu1 %vm343_vm0, %v3155_v56  ;;  %2387 = vmatprep.mubr.msk.f32.mxu0 %vm343_vm0, %v3158_v57 }
  0x9d   : > { %2443 = vmatprep.mubr.msk.f32.mxu1 %vm343_vm0, %v3164_v58 }
  0x9f   : > { %2388 = vmatmul.mubr.msk.f32.gmra.mrb[20].mxu0 %vm343_vm0, %v3182_v59 }
  0xa0   : > { %2444 = vmatmul.mubr.msk.f32.gmra.mrb[20].mxu1 %vm343_vm0, %v3187_v60  ;;  %2390 = vmatprep.mubr.msk.f32.mxu0 %vm343_vm0, %v3190_v61 }
  0xa1   : > { %2446 = vmatprep.mubr.msk.f32.mxu1 %vm343_vm0, %v3193_v62 }
  0xa3   : > { %2391 = vmatmul.mubr.msk.f32.gmra.mrb[22].mxu0 %vm343_vm0, %v3202_v63 }
  0xa4   : > { %2447 = vmatmul.mubr.msk.f32.gmra.mrb[22].mxu1 %vm343_vm0, %v3210_v1  ;;  %2393 = vmatprep.mubr.msk.f32.mxu0 %vm343_vm0, %v3213_v2 }
  0xa5   : > { %2449 = vmatprep.mubr.msk.f32.mxu1 %vm343_vm0, %v3222_v3 }
  0xa7   : > { %2394 = vmatmul.mubr.msk.f32.gmra.mrb[24].mxu0 %vm343_vm0, %v3234_v4 }
  0xa8   : > { %2450 = vmatmul.mubr.msk.f32.gmra.mrb[24].mxu1 %vm343_vm0, %v3239_v5  ;;  %2396 = vmatprep.mubr.msk.f32.mxu0 %vm343_vm0, %v3242_v6 }
  0xa9   : > { %2452 = vmatprep.mubr.msk.f32.mxu1 %vm343_vm0, %v3245_v7 }
  0xab   : > { %2397 = vmatmul.mubr.msk.f32.gmra.mrb[26].mxu0 %vm343_vm0, %v3254_v8 }
  0xac   : > { %2453 = vmatmul.mubr.msk.f32.gmra.mrb[26].mxu1 %vm343_vm0, %v3262_v9  ;;  %2399 = vmatprep.mubr.msk.f32.mxu0 %vm343_vm0, %v3265_v10 }
  0xad   : > { %2455 = vmatprep.mubr.msk.f32.mxu1 %vm343_vm0, %v307_v11 }
  0xaf   : > { %2400 = vmatmul.mubr.msk.f32.gmra.mrb[28].mxu0 %vm343_vm0, %v292_v12 }
  0xb0   : > { %2456 = vmatmul.mubr.msk.f32.gmra.mrb[28].mxu1 %vm343_vm0, %v308_v13  ;;  %2402 = vmatprep.mubr.msk.f32.mxu0 %vm343_vm0, %v293_v14 }
  0xb1   : > { %2458 = vmatprep.mubr.msk.f32.mxu1 %vm343_vm0, %v309_v15 }
  0xb3   : > { %2403 = vmatmul.mubr.msk.f32.gmra.mrb[30].mxu0 %vm343_vm0, %v294_v16 }
  0xb4   : > { %2459 = vmatmul.mubr.msk.f32.gmra.mrb[30].mxu1 %vm343_vm0, %v310_v17 }
 0x129   : > { %v2271_v0 = vpop.f32.mrb[0].mxu0 }
 0x12a   : > { %v586_v18 = vmin.f32 %v2271_v0, 0.0  ;;  %v506_v19 = vpop.f32.mrb[1].mxu0  ;;  %v2327_v20 = vpop.f32.mrb[0].mxu1 }
 0x12b   : > { %v585_v21 = vmin.f32 %v506_v19, 0.0  ;;  %v875_v22 = vmin.f32 %v2327_v20, 0.0  ;;  %v795_v23 = vpop.f32.mrb[1].mxu1 }
 0x12c   : > { %v603_v24 = vmul.f32 1.442695, %v586_v18  ;;  %v874_v25 = vmin.f32 %v795_v23, 0.0 }
 0x12d   : > { %v601_v26 = vmul.f32 1.442695, %v585_v21  ;;  %v892_v27 = vmul.f32 1.442695, %v875_v22  ;;  %v2274_v28 = vpop.f32.mrb[2].mxu0 }
 0x12e   : > { %2694 = vpow2.f32 %v603_v24  ;;  %v890_v29 = vmul.f32 1.442695, %v874_v25  ;;  %v516_v30 = vpop.f32.mrb[3].mxu0  ;;  %v2330_v31 = vpop.f32.mrb[2].mxu1  ;;  %v588_v33 = vmin.f32 %v2274_v28, 0.0 }
 0x12f   : > { %2696 = vpow2.f32 %v601_v26  ;;  %v805_v32 = vpop.f32.mrb[3].mxu1  ;;  %v587_v34 = vmin.f32 %v516_v30, 0.0  ;;  %v877_v40 = vmin.f32 %v2330_v31, 0.0 }
 0x130   : > { %2698 = vpow2.f32 %v892_v27  ;;  %v607_v39 = vmul.f32 1.442695, %v588_v33  ;;  %v876_v42 = vmin.f32 %v805_v32, 0.0 }
 0x131   : > { %2700 = vpow2.f32 %v890_v29  ;;  %v2277_v35 = vpop.f32.mrb[4].mxu0  ;;  %v605_v41 = vmul.f32 1.442695, %v587_v34  ;;  %v896_v48 = vmul.f32 1.442695, %v877_v40 }
 0x132   : > { %v526_v36 = vpop.f32.mrb[5].mxu0  ;;  %v2333_v37 = vpop.f32.mrb[4].mxu1  ;;  %2702 = vpow2.f32 %v607_v39  ;;  %v894_v50 = vmul.f32 1.442695, %v876_v42  ;;  %v590_v57 = vmin.f32 %v2277_v35, 0.0 }
 0x133   : > { %v815_v38 = vpop.f32.mrb[5].mxu1  ;;  %2704 = vpow2.f32 %v605_v41  ;;  %v589_v58 = vmin.f32 %v526_v36, 0.0  ;;  %v879_v3 = vmin.f32 %v2333_v37, 0.0 }
 0x134   : > { %2706 = vpow2.f32 %v896_v48  ;;  %v611_v1 = vmul.f32 1.442695, %v590_v57  ;;  %v878_v5 = vmin.f32 %v815_v38, 0.0 }
 0x135   : > { %v2280_v43 = vpop.f32.mrb[6].mxu0  ;;  %2708 = vpow2.f32 %v894_v50  ;;  %v609_v4 = vmul.f32 1.442695, %v589_v58  ;;  %v900_v12 = vmul.f32 1.442695, %v879_v3 }
 0x136   : > { %v3407_v44 = vpop.f32.mrb[7].mxu0  ;;  %v3409_v45 = vpop.f32.mrb[6].mxu1  ;;  %2710 = vpow2.f32 %v611_v1  ;;  %v898_v13 = vmul.f32 1.442695, %v878_v5  ;;  %v592_v19 = vmin.f32 %v2280_v43, 0.0 }
 0x137   : > { %v3411_v46 = vpop.f32.mrb[7].mxu1  ;;  %2712 = vpow2.f32 %v609_v4  ;;  %v591_v20 = vmin.f32 %v3407_v44, 0.0  ;;  %v881_v24 = vmin.f32 %v3409_v45, 0.0 }
 0x138   : > { %v2695_v47 = vpop.eup %2694  ;;  %2714 = vpow2.f32 %v900_v12  ;;  %v615_v22 = vmul.f32 1.442695, %v592_v19  ;;  %v880_v26 = vmin.f32 %v3411_v46, 0.0 }
 0x139   : > { %v2697_v49 = vpop.eup %2696  ;;  %1462 = vadd.xlane.f32.xlu1 %v2695_v47  ;;  %v3413_v51 = vpop.f32.mrb[8].mxu0  ;;  %v1621_v62 = vmul.f32 %v2695_v47, %v2695_v47  ;;  %2716 = vpow2.f32 %v898_v13  ;;  %v613_v25 = vmul.f32 1.442695, %v591_v20  ;;  %v904_v29 = vmul.f32 1.442695, %v881_v24 }
 0x13a   : > { %v2699_v52 = vpop.eup %2698  ;;  %1460 = vadd.xlane.f32.xlu0 %v2697_v49  ;;  %v3415_v53 = vpop.f32.mrb[9].mxu0  ;;  %v1620_v2 = vmul.f32 %v2697_v49, %v2697_v49  ;;  %2718 = vpow2.f32 %v615_v22  ;;  %v902_v30 = vmul.f32 1.442695, %v880_v26  ;;  %v594_v33 = vmin.f32 %v3413_v51, 0.0 }
 0x13b   : > { %v3417_v54 = vpop.f32.mrb[8].mxu1  ;;  %v2701_v55 = vpop.eup %2700  ;;  %2720 = vpow2.f32 %v613_v25  ;;  %v593_v34 = vmin.f32 %v3415_v53, 0.0 }
 0x13c   : > { %v3419_v56 = vpop.f32.mrb[9].mxu1  ;;  %v2703_v7 = vpop.eup %2702  ;;  %2722 = vpow2.f32 %v904_v29  ;;  %v619_v36 = vmul.f32 1.442695, %v594_v33  ;;  %v883_v38 = vmin.f32 %v3417_v54, 0.0 }
 0x13d   : > { %1494 = vadd.xlane.f32.xlu1 %v2699_v52  ;;  %v3421_v59 = vpop.f32.mrb[10].mxu0  ;;  %v2705_v10 = vpop.eup %2704  ;;  %v1623_v21 = vmul.f32 %v2703_v7, %v2703_v7  ;;  %2724 = vpow2.f32 %v902_v30  ;;  %v617_v39 = vmul.f32 1.442695, %v593_v34  ;;  %v882_v40 = vmin.f32 %v3419_v56, 0.0 }
 0x13e   : > { %1492 = vadd.xlane.f32.xlu0 %v2701_v55  ;;  %v3423_v60 = vpop.f32.mrb[11].mxu0  ;;  %v3425_v61 = vpop.f32.mrb[10].mxu1  ;;  %v1622_v23 = vmul.f32 %v2705_v10, %v2705_v10  ;;  %2726 = vpow2.f32 %v619_v36  ;;  %v908_v43 = vmul.f32 1.442695, %v883_v38  ;;  %v596_v47 = vmin.f32 %v3421_v59, 0.0 }
 0x13f   : > { %v3427_v63 = vpop.f32.mrb[11].mxu1  ;;  %v2707_v15 = vpop.eup %2706  ;;  %2728 = vpow2.f32 %v617_v39  ;;  %v906_v44 = vmul.f32 1.442695, %v882_v40  ;;  %v595_v48 = vmin.f32 %v3423_v60, 0.0  ;;  %v885_v52 = vmin.f32 %v3425_v61, 0.0 }
 0x140   : > { %v2709_v0 = vpop.eup %2708  ;;  %2730 = vpow2.f32 %v908_v43  ;;  %v623_v50 = vmul.f32 1.442695, %v596_v47  ;;  %v884_v54 = vmin.f32 %v3427_v63, 0.0 }
 0x141   : > { %1638 = vadd.xlane.f32.xlu1 %v1621_v62  ;;  %v3429_v6 = vpop.f32.mrb[12].mxu0  ;;  %v2711_v27 = vpop.eup %2710  ;;  %2732 = vpow2.f32 %v906_v44  ;;  %v621_v53 = vmul.f32 1.442695, %v595_v48  ;;  %v912_v57 = vmul.f32 1.442695, %v885_v52 }
 0x142   : > { %1636 = vadd.xlane.f32.xlu0 %v1620_v2  ;;  %v3431_v8 = vpop.f32.mrb[13].mxu0  ;;  %v3433_v9 = vpop.f32.mrb[12].mxu1  ;;  %v1625_v35 = vmul.f32 %v2711_v27, %v2711_v27  ;;  %2734 = vpow2.f32 %v623_v50  ;;  %v910_v58 = vmul.f32 1.442695, %v884_v54  ;;  %v598_v63 = vmin.f32 %v3429_v6, 0.0 }
 0x143   : > { %v3435_v11 = vpop.f32.mrb[13].mxu1  ;;  %v2713_v28 = vpop.eup %2712  ;;  %2736 = vpow2.f32 %v621_v53  ;;  %v597_v3 = vmin.f32 %v3431_v8, 0.0 }
 0x144   : > { %v2715_v31 = vpop.eup %2714  ;;  %v1624_v37 = vmul.f32 %v2713_v28, %v2713_v28  ;;  %2738 = vpow2.f32 %v912_v57  ;;  %v627_v12 = vmul.f32 1.442695, %v598_v63  ;;  %v886_v19 = vmin.f32 %v3435_v11, 0.0 }
 0x145   : > { %1466 = vadd.xlane.f32.xlu1 %v2703_v7  ;;  %v3437_v14 = vpop.f32.mrb[14].mxu0  ;;  %v2717_v32 = vpop.eup %2716  ;;  %2740 = vpow2.f32 %v910_v58  ;;  %v625_v6 = vmul.f32 1.442695, %v597_v3  ;;  %v3530_v63 = vstv %s2104_s22 }
 0x146   : > { %1464 = vadd.xlane.f32.xlu0 %v2705_v10  ;;  %v3439_v16 = vpop.f32.mrb[15].mxu0  ;;  %v3441_v17 = vpop.f32.mrb[14].mxu1  ;;  %2742 = vpow2.f32 %v627_v12  ;;  %v600_v30 = vmin.f32 %v3437_v14, 0.0 }
 0x147   : > { %v3443_v18 = vpop.f32.mrb[15].mxu1  ;;  %v2719_v41 = vpop.eup %2718  ;;  %2744 = vpow2.f32 %v625_v6  ;;  %v889_v33 = vmin.f32 %v3441_v17, 0.0  ;;  %v1346_v6 = vstv %s2105_s23 }
 0x148   : > { %v2721_v42 = vpop.eup %2720  ;;  %v1627_v49 = vmul.f32 %v2719_v41, %v2719_v41  ;;  %v888_v36 = vmin.f32 %v3443_v18, 0.0  ;;  %v631_v39 = vmul.f32 1.442695, %v600_v30 }
 0x149   : > { %1498 = vadd.xlane.f32.xlu1 %v2707_v15  ;;  %v2723_v45 = vpop.eup %2722  ;;  %v1626_v51 = vmul.f32 %v2721_v42, %v2721_v42  ;;  %v887_v15 = vmin.f32 %v3433_v9, 0.0  ;;  %v914_v9 = vmul.f32 1.442695, %v886_v19  ;;  %v920_v43 = vmul.f32 1.442695, %v889_v33 }
 0x14a   : > { %1496 = vadd.xlane.f32.xlu0 %v2709_v0  ;;  %v2725_v46 = vpop.eup %2724 }
 0x14b   : > { %v2727_v55 = vpop.eup %2726  ;;  %v916_v24 = vmul.f32 1.442695, %v887_v15 }
 0x14c   : > { %v2729_v56 = vpop.eup %2728  ;;  %v1629_v5 = vmul.f32 %v2727_v55, %v2727_v55 }
 0x14d   : > { %1642 = vadd.xlane.f32.xlu1 %v1623_v21  ;;  %v2731_v59 = vpop.eup %2730  ;;  %v1628_v13 = vmul.f32 %v2729_v56, %v2729_v56  ;;  %2746 = vpow2.f32 %v916_v24 }
 0x14e   : > { %1640 = vadd.xlane.f32.xlu0 %v1622_v23  ;;  %v2733_v62 = vpop.eup %2732  ;;  %2748 = vpow2.f32 %v914_v9 }
 0x14f   : > { %v2735_v20 = vpop.eup %2734  ;;  %2750 = vpow2.f32 %v631_v39 }
 0x150   : > { %v2737_v21 = vpop.eup %2736 }
 0x151   : > { %1470 = vadd.xlane.f32.xlu1 %v2711_v27  ;;  %v2739_v26 = vpop.eup %2738  ;;  %v1630_v14 = vmul.f32 %v2737_v21, %v2737_v21 }
 0x152   : > { %1468 = vadd.xlane.f32.xlu0 %v2713_v28  ;;  %v2741_v11 = vpop.eup %2740 }
 0x153   : > { %v2743_v17 = vpop.eup %2742 }
 0x154   : > { %v2745_v18 = vpop.eup %2744 }
 0x155   : > { %1502 = vadd.xlane.f32.xlu1 %v2715_v31  ;;  %v1632_v15 = vmul.f32 %v2745_v18, %v2745_v18 }
 0x156   : > { %1500 = vadd.xlane.f32.xlu0 %v2717_v32  ;;  %v599_v32 = vmin.f32 %v3439_v16, 0.0 }
 0x157   : > { %v2747_v52 = vpop.eup %2746 }
 0x158   : > { %v629_v16 = vmul.f32 1.442695, %v599_v32  ;;  %v2749_v54 = vpop.eup %2748 }
 0x159   : > { %1646 = vadd.xlane.f32.xlu1 %v1625_v35  ;;  %v1631_v35 = vmul.f32 %v2735_v20, %v2735_v20 }
 0x15a   : > { %1644 = vadd.xlane.f32.xlu0 %v1624_v37  ;;  %2752 = vpow2.f32 %v629_v16 }
 0x15b   : > { %2754 = vpow2.f32 %v920_v43 }
 0x15d   : > { %1474 = vadd.xlane.f32.xlu1 %v2719_v41 }
 0x15e   : > { %1472 = vadd.xlane.f32.xlu0 %v2721_v42 }
 0x161   : > { %1506 = vadd.xlane.f32.xlu1 %v2723_v45  ;;  %v918_v45 = vmul.f32 1.442695, %v888_v36 }
 0x162   : > { %1504 = vadd.xlane.f32.xlu0 %v2725_v46  ;;  %v1309_v46 = vlaneseq }
 0x163   : > { %2756 = vpow2.f32 %v918_v45 }
 0x164   : > { %v1345_v3 = vand.u32 127, %v1309_v46 }
 0x165   : > { %1650 = vadd.xlane.f32.xlu1 %v1627_v49 }
 0x166   : > { %1648 = vadd.xlane.f32.xlu0 %v1626_v51 }
 0x169   : > { %1478 = vadd.xlane.f32.xlu1 %v2727_v55  ;;  %v3516_v55 = vshrl.u32 %v1309_v46, 7 }
 0x16a   : > { %1476 = vadd.xlane.f32.xlu0 %v2729_v56  ;;  %v3456_v60 = vpop.f32.mrb[16].mxu0 }
 0x16b   : > { %v3458_v1 = vpop.f32.mrb[16].mxu1  ;;  %v3460_v61 = vpop.f32.mrb[17].mxu0  ;;  %v1068_v40 = vmin.f32 %v3456_v60, 0.0 }
 0x16c   : > { %v3463_v2 = vpop.f32.mrb[17].mxu1  ;;  %v1261_v42 = vmin.f32 %v3458_v1, 0.0  ;;  %v1067_v58 = vmin.f32 %v3460_v61, 0.0  ;;  %v1311_v1 = vadd.s32 8, %v3516_v55 }
 0x16d   : > { %1510 = vadd.xlane.f32.xlu1 %v2731_v59  ;;  %v1085_v49 = vmul.f32 1.442695, %v1068_v40  ;;  %v1260_v61 = vmin.f32 %v3463_v2, 0.0  ;;  %v1327_v40 = vadd.s32 %v3530_v63, %v3516_v55 }
 0x16e   : > { %1508 = vadd.xlane.f32.xlu0 %v2733_v62  ;;  %v3466_v4 = vpop.f32.mrb[18].mxu0  ;;  %v1278_v51 = vmul.f32 1.442695, %v1261_v42  ;;  %v1633_v62 = vmul.f32 %v2743_v17, %v2743_v17  ;;  %v1328_v9 = vadd.s32 %v3530_v63, %v1311_v1 }
 0x16f   : > { %v3468_v7 = vpop.f32.mrb[19].mxu0  ;;  %v3470_v10 = vpop.f32.mrb[18].mxu1  ;;  %2758 = vpow2.f32 %v1085_v49  ;;  %v1276_v30 = vmul.f32 1.442695, %v1260_v61 }
 0x170   : > { %v3473_v0 = vpop.f32.mrb[19].mxu1  ;;  %2760 = vpow2.f32 %v1278_v51  ;;  %v1263_v33 = vmin.f32 %v3470_v10, 0.0  ;;  %v1069_v16 = vmin.f32 %v3468_v7, 0.0  ;;  %v1313_v10 = vadd.s32 24, %v3516_v55 }
 0x171   : > { %1654 = vadd.xlane.f32.xlu1 %v1629_v5  ;;  %v1262_v42 = vmin.f32 %v3473_v0, 0.0 }
 0x172   : > { %1652 = vadd.xlane.f32.xlu0 %v1628_v13  ;;  %v3476_v8 = vpop.f32.mrb[20].mxu0  ;;  %v1083_v13 = vmul.f32 1.442695, %v1067_v58  ;;  %v1282_v36 = vmul.f32 1.442695, %v1263_v33  ;;  %v1330_v45 = vadd.s32 %v3530_v63, %v1313_v10  ;;  %v1312_v58 = vadd.s32 16, %v3516_v55 }
 0x173   : > { %v3478_v22 = vpop.f32.mrb[21].mxu0  ;;  %v3480_v23 = vpop.f32.mrb[20].mxu1  ;;  %v1280_v46 = vmul.f32 1.442695, %v1262_v42 }
 0x174   : > { %v3482_v25 = vpop.f32.mrb[21].mxu1  ;;  %2762 = vpow2.f32 %v1083_v13  ;;  %v1071_v1 = vmin.f32 %v3478_v22, 0.0 }
 0x175   : > { %1482 = vadd.xlane.f32.xlu1 %v2735_v20  ;;  %v1070_v20 = vmin.f32 %v3466_v4, 0.0  ;;  %2764 = vpow2.f32 %v1276_v30 }
 0x176   : > { %1480 = vadd.xlane.f32.xlu0 %v2737_v21  ;;  %v3484_v27 = vpop.f32.mrb[22].mxu0  ;;  %v3540_v21 = vpop.eup %2750 }
 0x177   : > { %v3486_v28 = vpop.f32.mrb[23].mxu0  ;;  %v3488_v29 = vpop.f32.mrb[22].mxu1  ;;  %v1089_v32 = vmul.f32 1.442695, %v1070_v20  ;;  %v1091_v20 = vmul.f32 1.442695, %v1071_v1 }
 0x178   : > { %v3491_v31 = vpop.f32.mrb[23].mxu1  ;;  %v3542_v24 = vpop.eup %2752 }
 0x179   : > { %1514 = vadd.xlane.f32.xlu1 %v2739_v26  ;;  %v3545_v26 = vadd.s32 %v1346_v6, %v1345_v3  ;;  %2766 = vpow2.f32 %v1089_v32  ;;  %v1329_v6 = vadd.s32 %v3530_v63, %v1312_v58  ;;  %v1315_v32 = vadd.s32 40, %v3516_v55 }
 0x17a   : > { %1512 = vadd.xlane.f32.xlu0 %v2741_v11  ;;  %v3495_v34 = vpop.f32.mrb[24].mxu0  ;;  %v2755_v11 = vpop.eup %2754  ;;  %2768 = vpow2.f32 %v1282_v36  ;;  %v1317_v58 = vadd.s32 56, %v3516_v55 }
 0x17b   : > { %v3498_v37 = vpop.f32.mrb[25].mxu0  ;;  %v3500_v38 = vpop.f32.mrb[24].mxu1  ;;  %vm1349_vm2 = vcmp.eq.s32.totalorder %v1328_v9, %v3545_v26  ;;  %vm1348_vm3 = vcmp.eq.s32.totalorder %v1327_v40, %v3545_v26  ;;  %vm1351_vm4 = vcmp.eq.s32.totalorder %v1330_v45, %v3545_v26  ;;  %v1264_v9 = vmin.f32 %v3482_v25, 0.0 }
 0x17c   : > { %v3503_v41 = vpop.f32.mrb[25].mxu1  ;;  %v2757_v2 = vpop.eup %2756  ;;  %vm1350_vm5 = vcmp.eq.s32.totalorder %v1329_v6, %v3545_v26  ;;  %v1332_v36 = vadd.s32 %v3530_v63, %v1315_v32  ;;  %v1074_v40 = vmin.f32 %v3484_v27, 0.0  ;;  %v1267_v45 = vmin.f32 %v3488_v29, 0.0 }
 0x17d   : > { %1658 = vadd.xlane.f32.xlu1 %v1631_v35  ;;  %v2759_v35 = vpop.eup %2758  ;;  %v1334_v1 = vadd.s32 %v3530_v63, %v1317_v58 }
 0x17e   : > { %1656 = vadd.xlane.f32.xlu0 %v1630_v14  ;;  %v3506_v44 = vpop.f32.mrb[26].mxu0  ;;  %v2761_v4 = vpop.eup %2760  ;;  %v1365_v14 = vsel %vm1349_vm2, 1.0, %v2759_v35  ;;  %v1314_v35 = vadd.s32 32, %v3516_v55  ;;  %vm1353_vm6 = vcmp.eq.s32.totalorder %v1332_v36, %v3545_v26  ;;  %v1319_v36 = vadd.s32 72, %v3516_v55 }
 0x17f   : > { %v3508_v47 = vpop.f32.mrb[27].mxu0  ;;  %v3510_v48 = vpop.f32.mrb[26].mxu1  ;;  %v1381_v39 = vsel %vm1349_vm2, 1.0, %v2761_v4  ;;  %vm1355_vm8 = vcmp.eq.s32.totalorder %v1334_v1, %v3545_v26  ;;  %vm1668_vm2 = vcmask 7168  }
 0x180   : > { %v3512_v50 = vpop.f32.mrb[27].mxu1  ;;  %v2763_v43 = vpop.eup %2762 }
 0x181   : > { %1486 = vadd.xlane.f32.xlu1 %v2743_v17  ;;  %v1525_v17 = vmul.f32 %v1365_v14, %v1365_v14  ;;  %v1364_v49 = vsel %vm1348_vm3, 1.0, %v2763_v43  ;;  %v2765_v51 = vpop.eup %2764 }
 0x182   : > { %1484 = vadd.xlane.f32.xlu0 %v2745_v18  ;;  %v3514_v53 = vpop.f32.mrb[28].mxu0  ;;  %v1087_v18 = vmul.f32 1.442695, %v1069_v16  ;;  %v1380_v0 = vsel %vm1348_vm3, 1.0, %v2765_v51  ;;  %v1524_v61 = vmul.f32 %v1364_v49, %v1364_v49  ;;  %v1073_v16 = vmin.f32 %v3486_v28, 0.0 }
 0x183   : > { %v3518_v56 = vpop.f32.mrb[29].mxu0  ;;  %v3520_v57 = vpop.f32.mrb[28].mxu1  ;;  %vm1685_vm3 = vcmask 15360  }
 0x184   : > { %v3524_v59 = vpop.f32.mrb[29].mxu1  ;;  %v2767_v7 = vpop.eup %2766  ;;  %2770 = vpow2.f32 %v1087_v18  ;;  %v1097_v18 = vmul.f32 1.442695, %v1074_v40 }
 0x185   : > { %1518 = vadd.xlane.f32.xlu1 %v2747_v52  ;;  %v1573_v52 = vmul.f32 %v1381_v39, %v1381_v39  ;;  %2772 = vpow2.f32 %v1280_v46  ;;  %v2769_v3 = vpop.eup %2768  ;;  %v1095_v46 = vmul.f32 1.442695, %v1073_v16 }
 0x186   : > { %1516 = vadd.xlane.f32.xlu0 %v2749_v54  ;;  %v3527_v60 = vpop.f32.mrb[30].mxu0  ;;  %v1072_v54 = vmin.f32 %v3476_v8, 0.0  ;;  %v1383_v8 = vsel %vm1351_vm4, 1.0, %v2769_v3 }
 0x187   : > { %v3532_v5 = vpop.f32.mrb[31].mxu0  ;;  %v3534_v12 = vpop.f32.mrb[30].mxu1  ;;  %v1575_v42 = vmul.f32 %v1383_v8, %v1383_v8 }
 0x188   : > { %v3537_v19 = vpop.f32.mrb[31].mxu1  ;;  %v1093_v13 = vmul.f32 1.442695, %v1072_v54 }
 0x189   : > { %1662 = vadd.xlane.f32.xlu1 %v1633_v62  ;;  %v1367_v62 = vsel %vm1351_vm4, 1.0, %v2767_v7  ;;  %vm1702_vm4 = vcmask 23552  }
 0x18a   : > { %1660 = vadd.xlane.f32.xlu0 %v1632_v15  ;;  %v1265_v15 = vmin.f32 %v3480_v23, 0.0  ;;  %2774 = vpow2.f32 %v1093_v13  ;;  %v1284_v23 = vmul.f32 1.442695, %v1264_v9  ;;  %v1527_v25 = vmul.f32 %v1367_v62, %v1367_v62 }
 0x18b   : > { %2776 = vpow2.f32 %v1091_v20  ;;  %v1076_v13 = vmin.f32 %v3495_v34, 0.0 }
 0x18c   : > { %v1286_v22 = vmul.f32 1.442695, %v1265_v15  ;;  %v1075_v15 = vmin.f32 %v3498_v37, 0.0 }
 0x18d   : > { %1490 = vadd.xlane.f32.xlu1 %v3540_v21 }
 0x18e   : > { %1488 = vadd.xlane.f32.xlu0 %v3542_v24  ;;  %v2771_v30 = vpop.eup %2770  ;;  %2778 = vpow2.f32 %v1286_v22  ;;  %v1099_v22 = vmul.f32 1.442695, %v1075_v15  ;;  %v1321_v15 = vadd.s32 88, %v3516_v55 }
 0x18f   : > { %v1366_v33 = vsel %vm1350_vm5, 1.0, %v2771_v30  ;;  %2780 = vpow2.f32 %v1284_v23  ;;  %v1269_v30 = vmin.f32 %v3500_v38, 0.0 }
 0x190   : > { %2782 = vpow2.f32 %v1097_v18 }
 0x191   : > { %1522 = vadd.xlane.f32.xlu1 %v2755_v11  ;;  %v1572_v11 = vmul.f32 %v1380_v0, %v1380_v0  ;;  %2784 = vpow2.f32 %v1095_v46 }
 0x192   : > { %1520 = vadd.xlane.f32.xlu0 %v2757_v2  ;;  %v2773_v2 = vpop.eup %2772 }
 0x193   : > { %v1382_v4 = vsel %vm1350_vm5, 1.0, %v2773_v2  ;;  %v1268_v2 = vmin.f32 %v3503_v41, 0.0  ;;  %vm1719_vm5 = vcmask 31744  }
 0x194   : > { %v2775_v10 = vpop.eup %2774  ;;  %v1574_v43 = vmul.f32 %v1382_v4, %v1382_v4 }
 0x195   : > { %1430 = vadd.xlane.f32.xlu1 %v1381_v39  ;;  %v1526_v39 = vmul.f32 %v1366_v33, %v1366_v33  ;;  %v1369_v27 = vsel %vm1353_vm6, 1.0, %v2775_v10  ;;  %v1292_v38 = vmul.f32 1.442695, %v1268_v2  ;;  %v1336_v10 = vadd.s32 %v3530_v63, %v1319_v36 }
 0x196   : > { %1398 = vadd.xlane.f32.xlu0 %v1365_v14  ;;  %v1331_v14 = vadd.s32 %v3530_v63, %v1314_v35  ;;  %v1273_v36 = vmin.f32 %v3520_v57, 0.0 }
 0x197   : > { %vm1357_vm10 = vcmp.eq.s32.totalorder %v1336_v10, %v3545_v26 }
 0x198   : > { %vm1352_vm7 = vcmp.eq.s32.totalorder %v1331_v14, %v3545_v26 }
 0x199   : > { %1542 = vadd.xlane.f32.xlu1 %v1525_v17  ;;  %v2777_v17 = vpop.eup %2776 }
 0x19a   : > { %1396 = vadd.xlane.f32.xlu0 %v1364_v49  ;;  %v1266_v49 = vmin.f32 %v3491_v31, 0.0  ;;  %v2779_v28 = vpop.eup %2778  ;;  %v1368_v51 = vsel %vm1352_vm7, 1.0, %v2777_v17  ;;  %v1316_v31 = vadd.s32 48, %v3516_v55 }
 0x19b   : > { %v2781_v7 = vpop.eup %2780  ;;  %v1385_v29 = vsel %vm1353_vm6, 1.0, %v2779_v28  ;;  %v1528_v3 = vmul.f32 %v1368_v51, %v1368_v51  ;;  %vm1736_vm6 = vcmask 39936  }
 0x19c   : > { %v1384_v54 = vsel %vm1352_vm7, 1.0, %v2781_v7  ;;  %v2783_v6 = vpop.eup %2782  ;;  %v1577_v20 = vmul.f32 %v1385_v29, %v1385_v29  ;;  %vm1753_vm7 = vcmask 48128  }
 0x19d   : > { %1590 = vadd.xlane.f32.xlu1 %v1573_v52  ;;  %v1290_v52 = vmul.f32 1.442695, %v1267_v45  ;;  %v1576_v9 = vmul.f32 %v1384_v54, %v1384_v54  ;;  %v1371_v34 = vsel %vm1355_vm8, 1.0, %v2783_v6  ;;  %v1077_v45 = vmin.f32 %v3508_v47, 0.0 }
 0x19e   : > { %1428 = vadd.xlane.f32.xlu0 %v1380_v0  ;;  %v1288_v0 = vmul.f32 1.442695, %v1266_v49  ;;  %v1531_v16 = vmul.f32 %v1371_v34, %v1371_v34  ;;  %v1320_v6 = vadd.s32 80, %v3516_v55 }
 0x19f   : > { %2786 = vpow2.f32 %v1290_v52  ;;  %v1271_v52 = vmin.f32 %v3510_v48, 0.0 }
 0x1a0   : > { %2788 = vpow2.f32 %v1288_v0  ;;  %v1103_v0 = vmul.f32 1.442695, %v1077_v45  ;;  %v1302_v45 = vmul.f32 1.442695, %v1273_v36 }
 0x1a1   : > { %1402 = vadd.xlane.f32.xlu1 %v1367_v62  ;;  %v1529_v62 = vmul.f32 %v1369_v27, %v1369_v27  ;;  %v1298_v1 = vmul.f32 1.442695, %v1271_v52 }
 0x1a2   : > { %1540 = vadd.xlane.f32.xlu0 %v1524_v61  ;;  %v1333_v61 = vadd.s32 %v3530_v63, %v1316_v31 }
 0x1a4   : > { %vm1354_vm9 = vcmp.eq.s32.totalorder %v1333_v61, %v3545_v26 }
 0x1a5   : > { %1434 = vadd.xlane.f32.xlu1 %v1383_v8  ;;  %v2785_v8 = vpop.eup %2784 }
 0x1a6   : > { %1588 = vadd.xlane.f32.xlu0 %v1572_v11  ;;  %v1101_v11 = vmul.f32 1.442695, %v1076_v13  ;;  %v1370_v23 = vsel %vm1354_vm9, 1.0, %v2785_v8 }
 0x1a8   : > { %2790 = vpow2.f32 %v1101_v11  ;;  %v1338_v11 = vadd.s32 %v3530_v63, %v1321_v15 }
 0x1a9   : > { %1400 = vadd.xlane.f32.xlu1 %v1366_v33  ;;  %v2787_v37 = vpop.eup %2786  ;;  %v1294_v33 = vmul.f32 1.442695, %v1269_v30  ;;  %2792 = vpow2.f32 %v1099_v22  ;;  %v1337_v22 = vadd.s32 %v3530_v63, %v1320_v6 }
 0x1aa   : > { %1432 = vadd.xlane.f32.xlu0 %v1382_v4  ;;  %v2789_v32 = vpop.eup %2788  ;;  %v1387_v4 = vsel %vm1355_vm8, 1.0, %v2787_v37  ;;  %v1079_v37 = vmin.f32 %v3518_v56, 0.0  ;;  %vm1359_vm12 = vcmp.eq.s32.totalorder %v1338_v11, %v3545_v26  ;;  %vm1770_vm8 = vcmask 56320  }
 0x1ab   : > { %v1386_v41 = vsel %vm1354_vm9, 1.0, %v2789_v32  ;;  %2794 = vpow2.f32 %v1294_v33  ;;  %v1579_v49 = vmul.f32 %v1387_v4, %v1387_v4  ;;  %vm1358_vm13 = vcmp.eq.s32.totalorder %v1337_v22, %v3545_v26 }
 0x1ac   : > { %2796 = vpow2.f32 %v1292_v38  ;;  %vm1791_vm9 = vcmask (!%p2106_p7), 64512  }
 0x1ad   : > { %1546 = vadd.xlane.f32.xlu1 %v1527_v25 }
 0x1ae   : > { %1544 = vadd.xlane.f32.xlu0 %v1526_v39  ;;  %v1318_v39 = vadd.s32 64, %v3516_v55 }
 0x1b0   : > { %v1335_v17 = vadd.s32 %v3530_v63, %v1318_v39  ;;  %v1107_v39 = vmul.f32 1.442695, %v1079_v37 }
 0x1b1   : > { %1594 = vadd.xlane.f32.xlu1 %v1575_v42  ;;  %v1530_v42 = vmul.f32 %v1370_v23, %v1370_v23 }
 0x1b2   : > { %1592 = vadd.xlane.f32.xlu0 %v1574_v43  ;;  %v1078_v43 = vmin.f32 %v3506_v44, 0.0  ;;  %v2791_v46 = vpop.eup %2790  ;;  %vm1356_vm11 = vcmp.eq.s32.totalorder %v1335_v17, %v3545_v26 }
 0x1b3   : > { %v2793_v28 = vpop.eup %2792  ;;  %v1373_v47 = vsel %vm1357_vm10, 1.0, %v2791_v46 }
 0x1b4   : > { %v1105_v7 = vmul.f32 1.442695, %v1078_v43  ;;  %v1372_v31 = vsel %vm1356_vm11, 1.0, %v2793_v28 }
 0x1b5   : > { %1406 = vadd.xlane.f32.xlu1 %v1369_v27  ;;  %v1532_v30 = vmul.f32 %v1372_v31, %v1372_v31 }
 0x1b6   : > { %1404 = vadd.xlane.f32.xlu0 %v1368_v51  ;;  %v1578_v51 = vmul.f32 %v1386_v41, %v1386_v41  ;;  %2798 = vpow2.f32 %v1105_v7  ;;  %v1322_v7 = vadd.s32 96, %v3516_v55 }
 0x1b7   : > { %2800 = vpow2.f32 %v1103_v0 }
 0x1b8   : > { %2802 = vpow2.f32 %v1298_v1 }
 0x1b9   : > { %1438 = vadd.xlane.f32.xlu1 %v1385_v29  ;;  %v1270_v29 = vmin.f32 %v3512_v50, 0.0 }
 0x1ba   : > { %1436 = vadd.xlane.f32.xlu0 %v1384_v54  ;;  %v2795_v54 = vpop.eup %2794 }
 0x1bb   : > { %v1389_v61 = vsel %vm1357_vm10, 1.0, %v2795_v54 }
 0x1bc   : > { %v1581_v33 = vmul.f32 %v1389_v61, %v1389_v61 }
 0x1bd   : > { %1550 = vadd.xlane.f32.xlu1 %v1529_v62  ;;  %v2797_v62 = vpop.eup %2796 }
 0x1be   : > { %1548 = vadd.xlane.f32.xlu0 %v1528_v3  ;;  %v1296_v3 = vmul.f32 1.442695, %v1270_v29  ;;  %v1388_v50 = vsel %vm1356_vm11, 1.0, %v2797_v62  ;;  %v1082_v62 = vmin.f32 %v3527_v60, 0.0 }
 0x1c0   : > { %2804 = vpow2.f32 %v1296_v3  ;;  %v1081_v3 = vmin.f32 %v3532_v5, 0.0  ;;  %v1113_v11 = vmul.f32 1.442695, %v1082_v62 }
 0x1c1   : > { %1598 = vadd.xlane.f32.xlu1 %v1577_v20 }
 0x1c2   : > { %1596 = vadd.xlane.f32.xlu0 %v1576_v9  ;;  %v1533_v9 = vmul.f32 %v1373_v47, %v1373_v47  ;;  %v1111_v22 = vmul.f32 1.442695, %v1081_v3 }
 0x1c5   : > { %1410 = vadd.xlane.f32.xlu1 %v1371_v34  ;;  %v1080_v34 = vmin.f32 %v3514_v53, 0.0 }
 0x1c6   : > { %v3602_v35 = vpop.xlane.xlu1 %1462  ;;  %1408 = vadd.xlane.f32.xlu0 %v1370_v23  ;;  %v2799_v23 = vpop.eup %2798 }
 0x1c7   : > { %v3606_v25 = vpop.xlane.xlu0 %1460  ;;  %v2801_v38 = vpop.eup %2800  ;;  %v1375_v56 = vsel %vm1359_vm12, 1.0, %v2799_v23 }
 0x1c8   : > { %v2803_v10 = vpop.eup %2802  ;;  %v1374_v17 = vsel %vm1358_vm13, 1.0, %v2801_v38 }
 0x1c9   : > { %1442 = vadd.xlane.f32.xlu1 %v1387_v4  ;;  %v1580_v4 = vmul.f32 %v1388_v50, %v1388_v50  ;;  %v1534_v54 = vmul.f32 %v1374_v17, %v1374_v17 }
 0x1ca   : > { %v3612_v14 = vpop.xlane.xlu1 %1494  ;;  %1440 = vadd.xlane.f32.xlu0 %v1386_v41  ;;  %v1109_v41 = vmul.f32 1.442695, %v1080_v34  ;;  %v2805_v43 = vpop.eup %2804  ;;  %v1274_v34 = vmin.f32 %v3537_v19, 0.0 }
 0x1cb   : > { %v3614_v40 = vpop.xlane.xlu0 %1492 }
 0x1cc   : > { %2806 = vpow2.f32 %v1109_v41  ;;  %v1304_v41 = vmul.f32 1.442695, %v1274_v34 }
 0x1cd   : > { %1554 = vadd.xlane.f32.xlu1 %v1531_v16  ;;  %v1272_v16 = vmin.f32 %v3524_v59, 0.0  ;;  %2808 = vpow2.f32 %v1107_v39  ;;  %v1390_v59 = vsel %vm1358_vm13, 1.0, %v2805_v43 }
 0x1ce   : > { %v3619_v18 = vpop.xlane.xlu1 %1638  ;;  %1552 = vadd.xlane.f32.xlu0 %v1530_v42  ;;  %2810 = vpow2.f32 %v1302_v45 }
 0x1cf   : > { %v3622_v27 = vpop.xlane.xlu0 %1636  ;;  %v1300_v46 = vmul.f32 1.442695, %v1272_v16  ;;  %v1324_v16 = vadd.s32 112, %v3516_v55 }
 0x1d1   : > { %1602 = vadd.xlane.f32.xlu1 %v1579_v49  ;;  %v1391_v49 = vsel %vm1359_vm12, 1.0, %v2803_v10  ;;  %2812 = vpow2.f32 %v1300_v46 }
 0x1d2   : > { %v3627_v44 = vpop.xlane.xlu1 %1466  ;;  %1600 = vadd.xlane.f32.xlu0 %v1578_v51  ;;  %v1323_v51 = vadd.s32 104, %v3516_v55  ;;  %v1583_v15 = vmul.f32 %v1391_v49, %v1391_v49  ;;  %2814 = vpow2.f32 %v1113_v11 }
 0x1d3   : > { %v3632_v58 = vpop.xlane.xlu0 %1464  ;;  %2816 = vpow2.f32 %v1111_v22 }
 0x1d4   : > { %v1340_v29 = vadd.s32 %v3530_v63, %v1323_v51 }
 0x1d5   : > { %1414 = vadd.xlane.f32.xlu1 %v1373_v47  ;;  %v1535_v47 = vmul.f32 %v1375_v56, %v1375_v56 }
 0x1d6   : > { %v3636_v48 = vpop.xlane.xlu1 %1498  ;;  %1412 = vadd.xlane.f32.xlu0 %v1372_v31  ;;  %v1339_v31 = vadd.s32 %v3530_v63, %v1322_v7  ;;  %vm1361_vm14 = vcmp.eq.s32.totalorder %v1340_v29, %v3545_v26 }
 0x1d7   : > { %v3640_v13 = vpop.xlane.xlu0 %1496 }
 0x1d8   : > { %vm1360_vm15 = vcmp.eq.s32.totalorder %v1339_v31, %v3545_v26 }
 0x1d9   : > { %1446 = vadd.xlane.f32.xlu1 %v1389_v61  ;;  %v2807_v61 = vpop.eup %2806 }
 0x1da   : > { %v3646_v20 = vpop.xlane.xlu1 %1642  ;;  %1444 = vadd.xlane.f32.xlu0 %v1388_v50  ;;  %v2809_v6 = vpop.eup %2808  ;;  %v1377_v5 = vsel %vm1361_vm14, 1.0, %v2807_v61 }
 0x1db   : > { %v3648_v8 = vpop.xlane.xlu0 %1640  ;;  %v2811_v37 = vpop.eup %2810 }
 0x1dc   : > { %v2813_v38 = vpop.eup %2812  ;;  %v1393_v36 = vsel %vm1361_vm14, 1.0, %v2811_v37 }
 0x1dd   : > { %1558 = vadd.xlane.f32.xlu1 %v1533_v9  ;;  %v1582_v9 = vmul.f32 %v1390_v59, %v1390_v59  ;;  %v1392_v19 = vsel %vm1360_vm15, 1.0, %v2813_v38  ;;  %v2815_v51 = vpop.eup %2814 }
 0x1de   : > { %v3653_v2 = vpop.xlane.xlu1 %1470  ;;  %1556 = vadd.xlane.f32.xlu0 %v1532_v30  ;;  %v1275_v30 = vmin.f32 %v3534_v12, 0.0  ;;  %v1584_v29 = vmul.f32 %v1392_v19, %v1392_v19 }
 0x1df   : > { %v3656_v32 = vpop.xlane.xlu0 %1468 }
 0x1e1   : > { %1606 = vadd.xlane.f32.xlu1 %v1581_v33  ;;  %v1376_v33 = vsel %vm1360_vm15, 1.0, %v2809_v6 }
 0x1e2   : > { %v3661_v53 = vpop.xlane.xlu1 %1502  ;;  %1604 = vadd.xlane.f32.xlu0 %v1580_v4  ;;  %v1306_v4 = vmul.f32 1.442695, %v1275_v30  ;;  %v1536_v46 = vmul.f32 %v1376_v33, %v1376_v33 }
 0x1e3   : > { %v3666_v42 = vpop.xlane.xlu0 %1500 }
 0x1e4   : > { %2818 = vpow2.f32 %v1306_v4 }
 0x1e5   : > { %1418 = vadd.xlane.f32.xlu1 %v1375_v56  ;;  %v1325_v56 = vadd.s32 120, %v3516_v55  ;;  %2820 = vpow2.f32 %v1304_v41  ;;  %v1585_v55 = vmul.f32 %v1393_v36, %v1393_v36 }
 0x1e6   : > { %v3670_v57 = vpop.xlane.xlu1 %1646  ;;  %1416 = vadd.xlane.f32.xlu0 %v1374_v17  ;;  %v1537_v17 = vmul.f32 %v1377_v5, %v1377_v5 }
 0x1e7   : > { %v3674_v28 = vpop.xlane.xlu0 %1644  ;;  %v1342_v45 = vadd.s32 %v3530_v63, %v1325_v56 }
 0x1e9   : > { %1450 = vadd.xlane.f32.xlu1 %v1391_v49  ;;  %v1341_v49 = vadd.s32 %v3530_v63, %v1324_v16  ;;  %vm1363_vm0 = vcmp.eq.s32.totalorder %v1342_v45, %v3545_v26 }
 0x1ea   : > { %v3680_v52 = vpop.xlane.xlu1 %1474  ;;  %1448 = vadd.xlane.f32.xlu0 %v1390_v59  ;;  %v1379_v31 = vsel %vm1363_vm0, 1.0, %v2815_v51 }
 0x1eb   : > { %v3682_v0 = vpop.xlane.xlu0 %1472  ;;  %vm1362_vm1 = vcmp.eq.s32.totalorder %v1341_v49, %v3545_v26  ;;  %v1539_v30 = vmul.f32 %v1379_v31, %v1379_v31 }
 0x1ed   : > { %1562 = vadd.xlane.f32.xlu1 %v1535_v47  ;;  %v2817_v47 = vpop.eup %2816 }
 0x1ee   : > { %v3687_v1 = vpop.xlane.xlu1 %1506  ;;  %1560 = vadd.xlane.f32.xlu0 %v1534_v54  ;;  %v2819_v63 = vpop.eup %2818  ;;  %v1378_v3 = vsel %vm1362_vm1, 1.0, %v2817_v47 }
 0x1ef   : > { %v3690_v50 = vpop.xlane.xlu0 %1504  ;;  %v2821_v61 = vpop.eup %2820  ;;  %v1395_v6 = vsel %vm1363_vm0, 1.0, %v2819_v63 }
 0x1f0   : > { %v1394_v11 = vsel %vm1362_vm1, 1.0, %v2821_v61  ;;  %v1587_v37 = vmul.f32 %v1395_v6, %v1395_v6 }
 0x1f1   : > { %1610 = vadd.xlane.f32.xlu1 %v1583_v15  ;;  %v1586_v38 = vmul.f32 %v1394_v11, %v1394_v11 }
 0x1f2   : > { %v3695_v60 = vpop.xlane.xlu1 %1650  ;;  %1608 = vadd.xlane.f32.xlu0 %v1582_v9 }
 0x1f3   : > { %v3700_v23 = vpop.xlane.xlu0 %1648 }
 0x1f5   : > { %1422 = vadd.xlane.f32.xlu1 %v1377_v5  ;;  %v1538_v5 = vmul.f32 %v1378_v3, %v1378_v3 }
 0x1f6   : > { %v3704_v12 = vpop.xlane.xlu1 %1478  ;;  %1420 = vadd.xlane.f32.xlu0 %v1376_v33 }
 0x1f7   : > { %v3708_v39 = vpop.xlane.xlu0 %1476 }
 0x1f9   : > { %1454 = vadd.xlane.f32.xlu1 %v1393_v36  ;;  %v1635_v36 = vmul.f32 %v3540_v21, %v3540_v21 }
 0x1fa   : > { %v3714_v10 = vpop.xlane.xlu1 %1510  ;;  %1452 = vadd.xlane.f32.xlu0 %v1392_v19  ;;  %v1634_v19 = vmul.f32 %v3542_v24, %v3542_v24 }
 0x1fb   : > { %v3716_v43 = vpop.xlane.xlu0 %1508 }
 0x1fd   : > { %1566 = vadd.xlane.f32.xlu1 %v1537_v17 }
 0x1fe   : > { %v3720_v59 = vpop.xlane.xlu1 %1654  ;;  %1564 = vadd.xlane.f32.xlu0 %v1536_v46 }
 0x1ff   : > { %v3722_v7 = vpop.xlane.xlu0 %1652 }
 0x201   : > { %1614 = vadd.xlane.f32.xlu1 %v1585_v55 }
 0x202   : > { %v3726_v54 = vpop.xlane.xlu1 %1482  ;;  %1612 = vadd.xlane.f32.xlu0 %v1584_v29 }
 0x203   : > { %v3728_v62 = vpop.xlane.xlu0 %1480 }
 0x205   : > { %1426 = vadd.xlane.f32.xlu1 %v1379_v31 }
 0x206   : > { %v3730_v15 = vpop.xlane.xlu1 %1514  ;;  %1424 = vadd.xlane.f32.xlu0 %v1378_v3 }
 0x207   : > { %v3732_v9 = vpop.xlane.xlu0 %1512 }
 0x209   : > { %1458 = vadd.xlane.f32.xlu1 %v1395_v6 }
 0x20a   : > { %v3734_v26 = vpop.xlane.xlu1 %1658  ;;  %1456 = vadd.xlane.f32.xlu0 %v1394_v11 }
 0x20b   : > { %v3736_v22 = vpop.xlane.xlu0 %1656 }
 0x20d   : > { %1570 = vadd.xlane.f32.xlu1 %v1539_v30 }
 0x20e   : > { %v3738_v34 = vpop.xlane.xlu1 %1486  ;;  %1568 = vadd.xlane.f32.xlu0 %v1538_v5 }
 0x20f   : > { %v3740_v33 = vpop.xlane.xlu0 %1484 }
 0x211   : > { %1618 = vadd.xlane.f32.xlu1 %v1587_v37 }
 0x212   : > { %v3742_v4 = vpop.xlane.xlu1 %1518  ;;  %1616 = vadd.xlane.f32.xlu0 %v1586_v38 }
 0x213   : > { %v3744_v41 = vpop.xlane.xlu0 %1516 }
 0x215   : > { %1666 = vadd.xlane.f32.xlu1 %v1635_v36 }
 0x216   : > { %v3750_v56 = vpop.xlane.xlu1 %1662  ;;  %1664 = vadd.xlane.f32.xlu0 %v1634_v19 }
 0x217   : > { %v3752_v16 = vpop.xlane.xlu0 %1660 }
 0x21a   : > { %v3754_v17 = vpop.xlane.xlu1 %1490 }
 0x21b   : > { %v3756_v45 = vpop.xlane.xlu0 %1488 }
 0x21e   : > { %v3758_v46 = vpop.xlane.xlu1 %1522 }
 0x21f   : > { %v3760_v49 = vpop.xlane.xlu0 %1520 }
 0x222   : > { %v1431_v51 = vpop.xlane.xlu1 %1430 }
 0x223   : > { %v1399_v21 = vpop.xlane.xlu0 %1398 }
 0x224   : > { %v1670_v24 = vsel %vm1668_vm2, %v1399_v21, %v1431_v51 }
 0x225   : > { %v1687_v55 = vsel %vm1685_vm3, %v1670_v24, %v3602_v35 }
 0x226   : > { %v1543_v47 = vpop.xlane.xlu1 %1542  ;;  %v1704_v29 = vsel %vm1702_vm4, %v1687_v55, %v3612_v14 }
 0x227   : > { %v1721_v31 = vsel %vm1719_vm5, %v1704_v29, %v1543_v47  ;;  %v1397_v63 = vpop.xlane.xlu0 %1396 }
 0x22a   : > { %v1591_v3 = vpop.xlane.xlu1 %1590 }
 0x22b   : > { %v1738_v61 = vsel %vm1736_vm6, %v1721_v31, %v1591_v3  ;;  %v1429_v6 = vpop.xlane.xlu0 %1428 }
 0x22c   : > { %v1755_v11 = vsel %vm1753_vm7, %v1738_v61, %v3619_v18  ;;  %v1669_v30 = vsel %vm1668_vm2, %v1397_v63, %v1429_v6 }
 0x22d   : > { %v3773_v35 = vsel %vm1770_vm8, %v1755_v11, 0.0  ;;  %v1686_v14 = vsel %vm1685_vm3, %v1669_v30, %v3606_v25 }
 0x22e   : > { %v1403_v5 = vpop.xlane.xlu1 %1402  ;;  %v1703_v37 = vsel %vm1702_vm4, %v1686_v14, %v3614_v40 }
 0x22f   : > { %v1541_v38 = vpop.xlane.xlu0 %1540 }
 0x230   : > { %v1720_v36 = vsel %vm1719_vm5, %v1703_v37, %v1541_v38 }
 0x232   : > { %v1435_v19 = vpop.xlane.xlu1 %1434 }
 0x233   : > { %v1672_v51 = vsel %vm1668_vm2, %v1403_v5, %v1435_v19  ;;  %v1589_v21 = vpop.xlane.xlu0 %1588 }
 0x234   : > { %v1737_v18 = vsel %vm1736_vm6, %v1720_v36, %v1589_v21  ;;  %v1689_v47 = vsel %vm1685_vm3, %v1672_v51, %v3627_v44 }
 0x235   : > { %v1754_v24 = vsel %vm1753_vm7, %v1737_v18, %v3622_v27  ;;  %v1706_v63 = vsel %vm1702_vm4, %v1689_v47, %v3636_v48 }
 0x236   : > { %v3785_v55 = vsel %vm1770_vm8, %v1754_v24, 0.0  ;;  %v1401_v25 = vpop.xlane.xlu1 %1400 }
 0x237   : > { %v1433_v40 = vpop.xlane.xlu0 %1432 }
 0x238   : > { %v1671_v29 = vsel %vm1668_vm2, %v1401_v25, %v1433_v40 }
 0x239   : > { %v1688_v31 = vsel %vm1685_vm3, %v1671_v29, %v3632_v58 }
 0x23a   : > { %v1547_v3 = vpop.xlane.xlu1 %1546  ;;  %v1705_v27 = vsel %vm1702_vm4, %v1688_v31, %v3640_v13 }
 0x23b   : > { %v1723_v61 = vsel %vm1719_vm5, %v1706_v63, %v1547_v3  ;;  %v1545_v6 = vpop.xlane.xlu0 %1544 }
 0x23c   : > { %v1722_v11 = vsel %vm1719_vm5, %v1705_v27, %v1545_v6 }
 0x23e   : > { %v1595_v30 = vpop.xlane.xlu1 %1594 }
 0x23f   : > { %v1740_v44 = vsel %vm1736_vm6, %v1723_v61, %v1595_v30  ;;  %v1593_v14 = vpop.xlane.xlu0 %1592 }
 0x240   : > { %v1757_v5 = vsel %vm1753_vm7, %v1740_v44, %v3646_v20  ;;  %v1739_v58 = vsel %vm1736_vm6, %v1722_v11, %v1593_v14 }
 0x241   : > { %v3803_v48 = vsel %vm1770_vm8, %v1757_v5, 0.0  ;;  %v1756_v13 = vsel %vm1753_vm7, %v1739_v58, %v3648_v8 }
 0x242   : > { %v3808_v37 = vsel %vm1770_vm8, %v1756_v13, 0.0  ;;  %v1407_v38 = vpop.xlane.xlu1 %1406 }
 0x243   : > { %v1405_v36 = vpop.xlane.xlu0 %1404 }
 0x246   : > { %v1439_v19 = vpop.xlane.xlu1 %1438 }
 0x247   : > { %v1674_v51 = vsel %vm1668_vm2, %v1407_v38, %v1439_v19  ;;  %v1437_v21 = vpop.xlane.xlu0 %1436 }
 0x248   : > { %v1691_v20 = vsel %vm1685_vm3, %v1674_v51, %v3653_v2  ;;  %v1673_v18 = vsel %vm1668_vm2, %v1405_v36, %v1437_v21 }
 0x249   : > { %v1690_v24 = vsel %vm1685_vm3, %v1673_v18, %v3656_v32  ;;  %v1708_v8 = vsel %vm1702_vm4, %v1691_v20, %v3661_v53 }
 0x24a   : > { %v1551_v25 = vpop.xlane.xlu1 %1550  ;;  %v1707_v47 = vsel %vm1702_vm4, %v1690_v24, %v3666_v42 }
 0x24b   : > { %v1725_v40 = vsel %vm1719_vm5, %v1708_v8, %v1551_v25  ;;  %v1549_v29 = vpop.xlane.xlu0 %1548 }
 0x24c   : > { %v1724_v31 = vsel %vm1719_vm5, %v1707_v47, %v1549_v29 }
 0x24e   : > { %v1599_v63 = vpop.xlane.xlu1 %1598 }
 0x24f   : > { %v1742_v2 = vsel %vm1736_vm6, %v1725_v40, %v1599_v63  ;;  %v1597_v3 = vpop.xlane.xlu0 %1596 }
 0x250   : > { %v1759_v27 = vsel %vm1753_vm7, %v1742_v2, %v3670_v57  ;;  %v1741_v32 = vsel %vm1736_vm6, %v1724_v31, %v1597_v3 }
 0x251   : > { %v3827_v53 = vsel %vm1770_vm8, %v1759_v27, 0.0  ;;  %v1758_v42 = vsel %vm1753_vm7, %v1741_v32, %v3674_v28 }
 0x252   : > { %v3832_v61 = vsel %vm1770_vm8, %v1758_v42, 0.0  ;;  %v1411_v6 = vpop.xlane.xlu1 %1410 }
 0x253   : > { %v1409_v11 = vpop.xlane.xlu0 %1408 }
 0x256   : > { %v1443_v30 = vpop.xlane.xlu1 %1442 }
 0x257   : > { %v1676_v44 = vsel %vm1668_vm2, %v1411_v6, %v1443_v30  ;;  %v1441_v14 = vpop.xlane.xlu0 %1440 }
 0x258   : > { %v1693_v57 = vsel %vm1685_vm3, %v1676_v44, %v3680_v52  ;;  %v1675_v5 = vsel %vm1668_vm2, %v1409_v11, %v1441_v14 }
 0x259   : > { %v1692_v58 = vsel %vm1685_vm3, %v1675_v5, %v3682_v0  ;;  %v1710_v28 = vsel %vm1702_vm4, %v1693_v57, %v3687_v1 }
 0x25a   : > { %v1555_v13 = vpop.xlane.xlu1 %1554  ;;  %v1709_v38 = vsel %vm1702_vm4, %v1692_v58, %v3690_v50 }
 0x25b   : > { %v1727_v36 = vsel %vm1719_vm5, %v1710_v28, %v1555_v13  ;;  %v1553_v19 = vpop.xlane.xlu0 %1552 }
 0x25c   : > { %v1726_v51 = vsel %vm1719_vm5, %v1709_v38, %v1553_v19 }
 0x25e   : > { %v1603_v21 = vpop.xlane.xlu1 %1602 }
 0x25f   : > { %v1744_v52 = vsel %vm1736_vm6, %v1727_v36, %v1603_v21  ;;  %v1601_v20 = vpop.xlane.xlu0 %1600 }
 0x260   : > { %v1761_v18 = vsel %vm1753_vm7, %v1744_v52, %v3695_v60  ;;  %v1743_v0 = vsel %vm1736_vm6, %v1726_v51, %v1601_v20 }
 0x261   : > { %v3851_v1 = vsel %vm1770_vm8, %v1761_v18, 0.0  ;;  %v1760_v50 = vsel %vm1753_vm7, %v1743_v0, %v3700_v23 }
 0x262   : > { %v3856_v24 = vsel %vm1770_vm8, %v1760_v50, 0.0  ;;  %v1415_v8 = vpop.xlane.xlu1 %1414 }
 0x263   : > { %v1413_v25 = vpop.xlane.xlu0 %1412 }
 0x266   : > { %v1447_v47 = vpop.xlane.xlu1 %1446 }
 0x267   : > { %v1678_v40 = vsel %vm1668_vm2, %v1415_v8, %v1447_v47  ;;  %v1445_v29 = vpop.xlane.xlu0 %1444 }
 0x268   : > { %v1695_v60 = vsel %vm1685_vm3, %v1678_v40, %v3704_v12  ;;  %v1677_v31 = vsel %vm1668_vm2, %v1413_v25, %v1445_v29 }
 0x269   : > { %v1694_v63 = vsel %vm1685_vm3, %v1677_v31, %v3708_v39  ;;  %v1712_v23 = vsel %vm1702_vm4, %v1695_v60, %v3714_v10 }
 0x26a   : > { %v1559_v2 = vpop.xlane.xlu1 %1558  ;;  %v1711_v27 = vsel %vm1702_vm4, %v1694_v63, %v3716_v43 }
 0x26b   : > { %v1557_v3 = vpop.xlane.xlu0 %1556  ;;  %v1729_v32 = vsel %vm1719_vm5, %v1712_v23, %v1559_v2 }
 0x26c   : > { %v1728_v6 = vsel %vm1719_vm5, %v1711_v27, %v1557_v3 }
 0x26e   : > { %v1607_v42 = vpop.xlane.xlu1 %1606 }
 0x26f   : > { %v1746_v12 = vsel %vm1736_vm6, %v1729_v32, %v1607_v42  ;;  %v1605_v11 = vpop.xlane.xlu0 %1604 }
 0x270   : > { %v1763_v30 = vsel %vm1753_vm7, %v1746_v12, %v3720_v59  ;;  %v1745_v39 = vsel %vm1736_vm6, %v1728_v6, %v1605_v11 }
 0x271   : > { %v3875_v44 = vsel %vm1770_vm8, %v1763_v30, 0.0  ;;  %v1762_v10 = vsel %vm1753_vm7, %v1745_v39, %v3722_v7 }
 0x272   : > { %v3880_v43 = vsel %vm1770_vm8, %v1762_v10, 0.0  ;;  %v1419_v14 = vpop.xlane.xlu1 %1418 }
 0x273   : > { %v1417_v57 = vpop.xlane.xlu0 %1416 }
 0x276   : > { %v1451_v5 = vpop.xlane.xlu1 %1450 }
 0x277   : > { %v1680_v58 = vsel %vm1668_vm2, %v1419_v14, %v1451_v5  ;;  %v1449_v28 = vpop.xlane.xlu0 %1448 }
 0x278   : > { %v1697_v59 = vsel %vm1685_vm3, %v1680_v58, %v3726_v54  ;;  %v1679_v13 = vsel %vm1668_vm2, %v1417_v57, %v1449_v28 }
 0x279   : > { %v1696_v38 = vsel %vm1685_vm3, %v1679_v13, %v3728_v62  ;;  %v1714_v7 = vsel %vm1702_vm4, %v1697_v59, %v3730_v15 }
 0x27a   : > { %v1563_v36 = vpop.xlane.xlu1 %1562  ;;  %v1713_v51 = vsel %vm1702_vm4, %v1696_v38, %v3732_v9 }
 0x27b   : > { %v1561_v19 = vpop.xlane.xlu0 %1560  ;;  %v1731_v21 = vsel %vm1719_vm5, %v1714_v7, %v1563_v36 }
 0x27c   : > { %v1730_v20 = vsel %vm1719_vm5, %v1713_v51, %v1561_v19 }
 0x27e   : > { %v1611_v52 = vpop.xlane.xlu1 %1610 }
 0x27f   : > { %v1748_v54 = vsel %vm1736_vm6, %v1731_v21, %v1611_v52  ;;  %v1609_v18 = vpop.xlane.xlu0 %1608 }
 0x280   : > { %v1765_v0 = vsel %vm1753_vm7, %v1748_v54, %v3734_v26  ;;  %v1747_v62 = vsel %vm1736_vm6, %v1730_v20, %v1609_v18  ;;  %v2862_v20 = vmov (!%p2106_p7), 0.0  }
 0x281   : > { %v3899_v50 = vsel %vm1770_vm8, %v1765_v0, 0.0  ;;  %v1764_v15 = vsel %vm1753_vm7, %v1747_v62, %v3736_v22  ;;  %1792 = vst.msk [vmem:[%s2951_s8] sm:$0xff] (!%p2106_p7), %vm1791_vm9, %v2862_v20  ;;  %1793 = vst.msk [vmem:[%s2951_s8 + $0x8] sm:$0xff] (!%p2106_p7), %vm1791_vm9, %v2862_v20 }
 0x282   : > { %v3904_v9 = vsel %vm1770_vm8, %v1764_v15, 0.0  ;;  %v1423_v8 = vpop.xlane.xlu1 %1422  ;;  %1794 = vst.msk [vmem:[%s2951_s8 + $0x10] sm:$0xff] (!%p2106_p7), %vm1791_vm9, %v2862_v20  ;;  %1795 = vst.msk [vmem:[%s2951_s8 + $0x18] sm:$0xff] (!%p2106_p7), %vm1791_vm9, %v2862_v20 }
 0x283   : > { %v1421_v25 = vpop.xlane.xlu0 %1420  ;;  %1796 = vst.msk [vmem:[%s2951_s8 + $0x20] sm:$0xff] (!%p2106_p7), %vm1791_vm9, %v2862_v20  ;;  %1797 = vst.msk [vmem:[%s2951_s8 + $0x28] sm:$0xff] (!%p2106_p7), %vm1791_vm9, %v2862_v20 }
 0x284   : > { %1798 = vst.msk [vmem:[%s2951_s8 + $0x30] sm:$0xff] (!%p2106_p7), %vm1791_vm9, %v2862_v20  ;;  %1799 = vst.msk [vmem:[%s2951_s8 + $0x38] sm:$0xff] (!%p2106_p7), %vm1791_vm9, %v2862_v20 }
 0x285   : > { %1800 = vst.msk [vmem:[%s2951_s8 + $0x40] sm:$0xff] (!%p2106_p7), %vm1791_vm9, %v2862_v20  ;;  %1801 = vst.msk [vmem:[%s2951_s8 + $0x48] sm:$0xff] (!%p2106_p7), %vm1791_vm9, %v2862_v20 }
 0x286   : > { %v1455_v47 = vpop.xlane.xlu1 %1454  ;;  %1802 = vst.msk [vmem:[%s2951_s8 + $0x50] sm:$0xff] (!%p2106_p7), %vm1791_vm9, %v2862_v20  ;;  %1803 = vst.msk [vmem:[%s2951_s8 + $0x58] sm:$0xff] (!%p2106_p7), %vm1791_vm9, %v2862_v20 }
 0x287   : > { %v1682_v40 = vsel %vm1668_vm2, %v1423_v8, %v1455_v47  ;;  %v1453_v29 = vpop.xlane.xlu0 %1452  ;;  %1804 = vst.msk [vmem:[%s2951_s8 + $0x60] sm:$0xff] (!%p2106_p7), %vm1791_vm9, %v2862_v20  ;;  %1805 = vst.msk [vmem:[%s2951_s8 + $0x68] sm:$0xff] (!%p2106_p7), %vm1791_vm9, %v2862_v20 }
 0x288   : > { %v1699_v26 = vsel %vm1685_vm3, %v1682_v40, %v3738_v34  ;;  %v1681_v60 = vsel %vm1668_vm2, %v1421_v25, %v1453_v29  ;;  %1806 = vst.msk [vmem:[%s2951_s8 + $0x70] sm:$0xff] (!%p2106_p7), %vm1791_vm9, %v2862_v20  ;;  %1807 = vst.msk [vmem:[%s2951_s8 + $0x78] sm:$0xff] (!%p2106_p7), %vm1791_vm9, %v2862_v20 }
 0x289   : > { %v1698_v31 = vsel %vm1685_vm3, %v1681_v60, %v3740_v33  ;;  %v1716_v22 = vsel %vm1702_vm4, %v1699_v26, %v3742_v4 }
 0x28a   : > { %v1567_v63 = vpop.xlane.xlu1 %1566  ;;  %v1715_v23 = vsel %vm1702_vm4, %v1698_v31, %v3744_v41 }
 0x28b   : > { %v1565_v2 = vpop.xlane.xlu0 %1564  ;;  %v1733_v3 = vsel %vm1719_vm5, %v1716_v22, %v1567_v63 }
 0x28c   : > { %v1732_v32 = vsel %vm1719_vm5, %v1715_v23, %v1565_v2 }
 0x28e   : > { %v1615_v27 = vpop.xlane.xlu1 %1614 }
 0x28f   : > { %v1750_v34 = vsel %vm1736_vm6, %v1733_v3, %v1615_v27  ;;  %v1613_v42 = vpop.xlane.xlu0 %1612 }
 0x290   : > { %v1767_v6 = vsel %vm1753_vm7, %v1750_v34, %v3750_v56  ;;  %v1749_v33 = vsel %vm1736_vm6, %v1732_v32, %v1613_v42 }
 0x291   : > { %v3923_v12 = vsel %vm1770_vm8, %v1767_v6, 0.0  ;;  %v1766_v4 = vsel %vm1753_vm7, %v1749_v33, %v3752_v16 }
 0x292   : > { %v3928_v41 = vsel %vm1770_vm8, %v1766_v4, 0.0  ;;  %v1427_v11 = vpop.xlane.xlu1 %1426 }
 0x293   : > { %v1425_v30 = vpop.xlane.xlu0 %1424 }
 0x296   : > { %v1459_v39 = vpop.xlane.xlu1 %1458 }
 0x297   : > { %v1457_v10 = vpop.xlane.xlu0 %1456  ;;  %v1684_v14 = vsel %vm1668_vm2, %v1427_v11, %v1459_v39 }
 0x298   : > { %v1683_v57 = vsel %vm1668_vm2, %v1425_v30, %v1457_v10  ;;  %v1701_v5 = vsel %vm1685_vm3, %v1684_v14, %v3754_v17 }
 0x299   : > { %v1700_v28 = vsel %vm1685_vm3, %v1683_v57, %v3756_v45  ;;  %v1718_v16 = vsel %vm1702_vm4, %v1701_v5, %v3758_v46 }
 0x29a   : > { %v1571_v56 = vpop.xlane.xlu1 %1570  ;;  %v1717_v13 = vsel %vm1702_vm4, %v1700_v28, %v3760_v49 }
 0x29b   : > { %v1569_v58 = vpop.xlane.xlu0 %1568  ;;  %v1735_v36 = vsel %vm1719_vm5, %v1718_v16, %v1571_v56 }
 0x29c   : > { %v1734_v7 = vsel %vm1719_vm5, %v1717_v13, %v1569_v58 }
 0x29e   : > { %v1619_v59 = vpop.xlane.xlu1 %1618 }
 0x29f   : > { %v1617_v38 = vpop.xlane.xlu0 %1616  ;;  %v1752_v19 = vsel %vm1736_vm6, %v1735_v36, %v1619_v59  ;;  %1790 = sbr.rel (%p2106_p7) target bundleno = 678 (0x2a6), region = 40 }
 0x2a0   : > { %v1751_v17 = vsel %vm1736_vm6, %v1734_v7, %v1617_v38 }
 0x2a2   : > { %v1667_v51 = vpop.xlane.xlu1 %1666 }
 0x2a3   : > { %v1769_v21 = vsel %vm1753_vm7, %v1752_v19, %v1667_v51  ;;  %v1665_v45 = vpop.xlane.xlu0 %1664 }
 0x2a4   : > { %v3946_v52 = vsel %vm1770_vm8, %v1769_v21, 0.0  ;;  %v1768_v46 = vsel %vm1753_vm7, %v1751_v17, %v1665_v45 }
 0x2a5   : > { %v1785_v49 = vsel %vm1770_vm8, %v1768_v46, 0.0 }
 0x2a6 PF: > { %v1808_v54 = vld [vmem:[%s2951_s8] sm:$0xff]  ;;  %vm1840_vm10 = vcmask 64512   ;;  %v1809_v18 = vld [vmem:[%s2951_s8 + $0x8] sm:$0xff]  ;;  %v1810_v0 = vld [vmem:[%s2951_s8 + $0x10] sm:$0xff] }
 0x2a7   : > { %v1824_v62 = vadd.f32 %v1808_v54, %v3785_v55  ;;  %v1825_v15 = vadd.f32 %v1809_v18, %v3773_v35  ;;  %v1826_v8 = vadd.f32 %v1810_v0, %v3808_v37  ;;  %v1811_v25 = vld [vmem:[%s2951_s8 + $0x18] sm:$0xff]  ;;  %v1812_v47 = vld [vmem:[%s2951_s8 + $0x20] sm:$0xff]  ;;  %v1813_v40 = vld [vmem:[%s2951_s8 + $0x28] sm:$0xff] }
 0x2a8   : > { %v1827_v29 = vadd.f32 %v1811_v25, %v3803_v48  ;;  %v1828_v26 = vadd.f32 %v1812_v47, %v3832_v61  ;;  %v1829_v60 = vadd.f32 %v1813_v40, %v3827_v53  ;;  %v1814_v55 = vld [vmem:[%s2951_s8 + $0x30] sm:$0xff]  ;;  %v1815_v31 = vld [vmem:[%s2951_s8 + $0x38] sm:$0xff]  ;;  %v1816_v35 = vld [vmem:[%s2951_s8 + $0x40] sm:$0xff] }
 0x2a9   : > { %1841 = vst.msk [vmem:[%s2951_s8] sm:$0xff] %vm1840_vm10, %v1824_v62  ;;  %1842 = vst.msk [vmem:[%s2951_s8 + $0x8] sm:$0xff] %vm1840_vm10, %v1825_v15  ;;  %v1830_v48 = vadd.f32 %v1814_v55, %v3856_v24  ;;  %v1831_v37 = vadd.f32 %v1815_v31, %v3851_v1  ;;  %v1832_v53 = vadd.f32 %v1816_v35, %v3880_v43  ;;  %v1817_v61 = vld [vmem:[%s2951_s8 + $0x48] sm:$0xff]  ;;  %v1818_v63 = vld [vmem:[%s2951_s8 + $0x50] sm:$0xff] }
 0x2aa   : > { %1843 = vst.msk [vmem:[%s2951_s8 + $0x10] sm:$0xff] %vm1840_vm10, %v1826_v8  ;;  %v1819_v22 = vld [vmem:[%s2951_s8 + $0x58] sm:$0xff]  ;;  %1844 = vst.msk [vmem:[%s2951_s8 + $0x18] sm:$0xff] %vm1840_vm10, %v1827_v29  ;;  %v1833_v24 = vadd.f32 %v1817_v61, %v3875_v44  ;;  %v1834_v1 = vadd.f32 %v1818_v63, %v3904_v9  ;;  %v1820_v2 = vld [vmem:[%s2951_s8 + $0x60] sm:$0xff] }
 0x2ab   : > { %1845 = vst.msk [vmem:[%s2951_s8 + $0x20] sm:$0xff] %vm1840_vm10, %v1828_v26  ;;  %1846 = vst.msk [vmem:[%s2951_s8 + $0x28] sm:$0xff] %vm1840_vm10, %v1829_v60  ;;  %v1835_v43 = vadd.f32 %v1819_v22, %v3899_v50  ;;  %v1821_v23 = vld [vmem:[%s2951_s8 + $0x68] sm:$0xff]  ;;  %v1822_v3 = vld [vmem:[%s2951_s8 + $0x70] sm:$0xff]  ;;  %v1836_v27 = vadd.f32 %v1820_v2, %v3928_v41 }
 0x2ac   : > { %1847 = vst.msk [vmem:[%s2951_s8 + $0x30] sm:$0xff] %vm1840_vm10, %v1830_v48  ;;  %1848 = vst.msk [vmem:[%s2951_s8 + $0x38] sm:$0xff] %vm1840_vm10, %v1831_v37  ;;  %v1837_v44 = vadd.f32 %v1821_v23, %v3923_v12  ;;  %v1838_v9 = vadd.f32 %v1822_v3, %v1785_v49  ;;  %v1823_v32 = vld [vmem:[%s2951_s8 + $0x78] sm:$0xff] }
 0x2ad   : > { %1849 = vst.msk [vmem:[%s2951_s8 + $0x40] sm:$0xff] %vm1840_vm10, %v1832_v53  ;;  %1850 = vst.msk [vmem:[%s2951_s8 + $0x48] sm:$0xff] %vm1840_vm10, %v1833_v24  ;;  %v1839_v50 = vadd.f32 %v1823_v32, %v3946_v52 }
 0x2ae   : > { %1851 = vst.msk [vmem:[%s2951_s8 + $0x50] sm:$0xff] %vm1840_vm10, %v1834_v1  ;;  %1852 = vst.msk [vmem:[%s2951_s8 + $0x58] sm:$0xff] %vm1840_vm10, %v1835_v43 }
 0x2af   : > { %1853 = vst.msk [vmem:[%s2951_s8 + $0x60] sm:$0xff] %vm1840_vm10, %v1836_v27  ;;  %1854 = vst.msk [vmem:[%s2951_s8 + $0x68] sm:$0xff] %vm1840_vm10, %v1837_v44 }
 0x2b0   : > { %1855 = vst.msk [vmem:[%s2951_s8 + $0x70] sm:$0xff] %vm1840_vm10, %v1838_v9  ;;  %1856 = vst.msk [vmem:[%s2951_s8 + $0x78] sm:$0xff] %vm1840_vm10, %v1839_v50 }
 0x2b1 PF: > { %s14_s19 = sadd.s32 1, %s2860_s19   ;;  %s4068_s15 = smov %s2852_s17 }
 0x2b2   : > { %p11_p8 = scmp.ge.s32.totalorder %s14_s19, 6   ;;  %s4069_s16 = smov %s2856_s18 }
 0x2b3   : > { %s4070_s17 = smov %s4073_s20  ;;  %s4071_s18 = smov %s4077_s21 }
 0x2b4   :  { %13 = sbr.rel (!%p11_p8) target bundleno = 3 (0x3), region = 79 }

</bundles_post_ra>
